<compile_context>
chip_gen: v5e
topology: v5e:2x2
jax: 0.10.0
libtpu: 0.0.40
codegen_flags: <defaults>
</compile_context>

<pallas_src>
import functools
import math

import jax
import jax.numpy as jnp
from jax.experimental import pallas as pl
from jax.experimental.pallas import tpu as pltpu


# ----------------------------------------------------------------------------
# Pallas kernels
# ----------------------------------------------------------------------------
def decoder_stack_kernel(x_ref, pe_ref, mask_ref,
                         wq_ref, wk_ref, wv_ref, bq_ref, bk_ref, bv_ref,
                         wo_ref, bo_ref, g1_ref, b1_ref,
                         wff1_ref, bff1_ref, wff2_ref, bff2_ref,
                         g2_ref, b2_ref,
                         out_ref,
                         x_scratch, heads_scratch,
                         *, num_heads, eps):
    """All L DecoderLayerAPE layers for one batch element, fused in a single pallas_call."""
    layer = pl.program_id(1)

    # Layer 0 pulls the activation from HBM; later layers use the resident VMEM copy.
    @pl.when(layer == 0)
    def _():
        x_scratch[...] = x_ref[0]

    x = x_scratch[...]                       # (S, D) f32
    pe = pe_ref[...]                         # (S, D) f32
    mask = mask_ref[...]                     # (S, S) f32 additive (0 / -1e9)
    S, D = x.shape
    dh = D // num_heads
    scale = 1.0 / math.sqrt(dh)

    # ---- multi-head self-attention (APE: positional encoding added to the attention input) ----
    xp = (x + pe).astype(jnp.bfloat16)       # bf16 MXU inputs, f32 accumulation
    q = jnp.dot(xp, wq_ref[0], preferred_element_type=jnp.float32) + bq_ref[0]
    k = jnp.dot(xp, wk_ref[0], preferred_element_type=jnp.float32) + bk_ref[0]
    v = jnp.dot(xp, wv_ref[0], preferred_element_type=jnp.float32) + bv_ref[0]

    # Per-head scores/softmax.  Head outputs are packed into one (S, D) scratch so the output
    # projection below is a single K=D matmul instead of H matmuls with K=dh.
    for h in range(num_heads):
        qh = q[:, h * dh:(h + 1) * dh].astype(jnp.bfloat16)
        kh = k[:, h * dh:(h + 1) * dh].astype(jnp.bfloat16)
        vh = v[:, h * dh:(h + 1) * dh].astype(jnp.bfloat16)
        s = jax.lax.dot_general(qh, kh, (((1,), (1,)), ((), ())),
                                preferred_element_type=jnp.float32) * scale + mask
        m = jnp.max(s, axis=-1, keepdims=True)
        p = jnp.exp(s - m)                                      # unnormalized probs
        denom = jnp.sum(p, axis=-1, keepdims=True)
        oh = jnp.dot(p.astype(jnp.bfloat16), vh, preferred_element_type=jnp.float32)
        oh = oh * pl.reciprocal(denom, approx=True)             # deferred softmax normalization
        heads_scratch[:, pl.ds(h * dh, dh)] = oh

    attn = (jnp.dot(heads_scratch[...].astype(jnp.bfloat16), wo_ref[0],
                    preferred_element_type=jnp.float32) + bo_ref[0])

    def layernorm(z, gamma, beta):
        mu = jnp.mean(z, axis=-1, keepdims=True)
        var = jnp.mean((z - mu) ** 2, axis=-1, keepdims=True)
        return gamma * (z - mu) / jnp.sqrt(var + eps) + beta

    # ---- residual + layer_norm1 (dropout1 == identity in eval) ----
    y1 = layernorm(attn + x, g1_ref[0], b1_ref[0])

    # ---- position-wise feed-forward: Linear -> ReLU -> Linear ----
    h1 = jnp.maximum(
        jnp.dot(y1.astype(jnp.bfloat16), wff1_ref[0],
                preferred_element_type=jnp.float32) + bff1_ref[0], 0.0)
    ff = (jnp.dot(h1.astype(jnp.bfloat16), wff2_ref[0],
                  preferred_element_type=jnp.float32) + bff2_ref[0])

    # ---- residual + layer_norm3 (dropout3 == identity) ----
    y2 = layernorm(ff + y1, g2_ref[0], b2_ref[0])

    x_scratch[...] = y2                      # carry activation to the next layer step

    @pl.when(layer == pl.num_programs(1) - 1)
    def _():
        out_ref[0] = y2


def final_linear_kernel(x_ref, w_ref, b_ref, out_ref):
    """nn.Linear(d_model, d_vocab) for one (batch, vocab-tile) grid step."""
    out_ref[0] = (jnp.dot(x_ref[0].astype(jnp.bfloat16), w_ref[...],
                          preferred_element_type=jnp.float32) + b_ref[...])


# ----------------------------------------------------------------------------
# Python wrappers calling pallas_call
# ----------------------------------------------------------------------------
_VMEM_LIMIT = 48 * 1024 * 1024   # above v5e/v6e scoped defaults, below v7x physical


def decoder_stack(x, pe, mask, p, *, num_heads, num_layers, eps=1e-5):
    B, S, D = x.shape
    F = p["w_ff1"].shape[-1]
    L = num_layers

    def full2(shape):                         # whole 2-D array, constant block index
        return pl.BlockSpec(shape, lambda b, l: (0, 0))

    def per_layer(shape):                     # (1, ...) block selecting layer l on stacked axis
        return pl.BlockSpec(shape, lambda b, l: (l, 0, 0))

    kern = functools.partial(decoder_stack_kernel, num_heads=num_heads, eps=eps)
    in_specs = [
        pl.BlockSpec((1, S, D), lambda b, l: (b, 0, 0)),              # x (read at layer 0)
        full2((S, D)),                                                # positional encoding
        full2((S, S)),                                                # additive mask (DMA'd once)
        per_layer((1, D, D)), per_layer((1, D, D)), per_layer((1, D, D)),   # Wq Wk Wv
        per_layer((1, 1, D)), per_layer((1, 1, D)), per_layer((1, 1, D)),   # bq bk bv
        per_layer((1, D, D)), per_layer((1, 1, D)),                   # Wo, bo
        per_layer((1, 1, D)), per_layer((1, 1, D)),                   # ln1 gamma/beta
        per_layer((1, D, F)), per_layer((1, 1, F)),                   # ffn W1, b1
        per_layer((1, F, D)), per_layer((1, 1, D)),                   # ffn W2, b2
        per_layer((1, 1, D)), per_layer((1, 1, D)),                   # ln3 gamma/beta
    ]
    return pl.pallas_call(
        kern,
        out_shape=jax.ShapeDtypeStruct((B, S, D), jnp.float32),
        grid=(B, L),
        in_specs=in_specs,
        out_specs=pl.BlockSpec((1, S, D), lambda b, l: (b, 0, 0)),
        scratch_shapes=[pltpu.VMEM((S, D), jnp.float32),              # resident activation
                        pltpu.VMEM((S, D), jnp.float32)],             # packed head outputs
        compiler_params=pltpu.CompilerParams(
            dimension_semantics=("parallel", "arbitrary"),
            vmem_limit_bytes=_VMEM_LIMIT),
    )(x, pe, mask,
      p["wq"], p["wk"], p["wv"], p["bq"], p["bk"], p["bv"],
      p["wo"], p["bo"], p["g1"], p["b1"],
      p["w_ff1"], p["b_ff1"], p["w_ff2"], p["b_ff2"],
      p["g2"], p["b2"])


def final_linear(x, w, b, *, tile_v=128):
    B, S, D = x.shape
    V = w.shape[1]
    tv = tile_v if V % tile_v == 0 else V      # lane-dense vocab tiles when possible
    return pl.pallas_call(
        final_linear_kernel,
        out_shape=jax.ShapeDtypeStruct((B, S, V), jnp.float32),
        grid=(B, V // tv),
        in_specs=[pl.BlockSpec((1, S, D), lambda b, j: (b, 0, 0)),
                  pl.BlockSpec((D, tv), lambda b, j: (0, j)),
                  pl.BlockSpec((1, tv), lambda b, j: (0, j))],
        out_specs=pl.BlockSpec((1, S, tv), lambda b, j: (b, 0, j)),
        compiler_params=pltpu.CompilerParams(
            dimension_semantics=("parallel", "parallel"),
            vmem_limit_bytes=_VMEM_LIMIT),
    )(x, w, b)


def decoder_ape_forward(y, decoder_mask, pe, params, *, num_heads, num_layers):
    x = decoder_stack(y, pe, decoder_mask, params,
                      num_heads=num_heads, num_layers=num_layers)
    return final_linear(x, params["w_out"], params["b_out"])


# ----------------------------------------------------------------------------
# Deterministic parameter init + pure-JAX reference for validation
# ----------------------------------------------------------------------------
def _linear_init(key, fan_in, fan_out):
    kw, kb = jax.random.split(key)
    bound = 1.0 / math.sqrt(fan_in)
    w = jax.random.uniform(kw, (fan_in, fan_out), jnp.float32, -bound, bound)
    b = jax.random.uniform(kb, (1, fan_out), jnp.float32, -bound, bound)
    return w.astype(jnp.bfloat16), b           # matmul weights stored bf16; biases f32


def init_params(key, num_layers, d_model, ffn_hidden, d_vocab):
    keys = jax.random.split(key, num_layers + 1)
    per = []
    for l in range(num_layers):
        ks = jax.random.split(keys[l], 6)
        wq, bq = _linear_init(ks[0], d_model, d_model)
        wk, bk = _linear_init(ks[1], d_model, d_model)
        wv, bv = _linear_init(ks[2], d_model, d_model)
        wo, bo = _linear_init(ks[3], d_model, d_model)
        w1, b1 = _linear_init(ks[4], d_model, ffn_hidden)
        w2, b2 = _linear_init(ks[5], ffn_hidden, d_model)
        per.append(dict(
            wq=wq, wk=wk, wv=wv, bq=bq, bk=bk, bv=bv, wo=wo, bo=bo,
            g1=jnp.ones((1, d_model), jnp.float32), b1=jnp.zeros((1, d_model), jnp.float32),
            w_ff1=w1, b_ff1=b1, w_ff2=w2, b_ff2=b2,
            g2=jnp.ones((1, d_model), jnp.float32), b2=jnp.zeros((1, d_model), jnp.float32)))
    params = {k: jnp.stack([p[k] for p in per]) for k in per[0]}
    w_out, b_out = _linear_init(keys[-1], d_model, d_vocab)
    params["w_out"], params["b_out"] = w_out, b_out
    return params


def sinusoidal_pe(seq_len, d_model):
    pos = jnp.arange(seq_len, dtype=jnp.float32)[:, None]
    i = jnp.arange(0, d_model, 2, dtype=jnp.float32)[None, :]
    angle = pos / jnp.power(10000.0, i / d_model)
    pe = jnp.zeros((seq_len, d_model), jnp.float32)
    pe = pe.at[:, 0::2].set(jnp.sin(angle))
    pe = pe.at[:, 1::2].set(jnp.cos(angle))
    return pe


def reference_forward(y, mask, pe, params, *, num_heads, num_layers, eps=1e-5):
    f32 = lambda a: a.astype(jnp.float32)

    def ln(z, g, b):
        mu = z.mean(-1, keepdims=True)
        var = ((z - mu) ** 2).mean(-1, keepdims=True)
        return g * (z - mu) / jnp.sqrt(var + eps) + b

    B, S, D = y.shape
    dh = D // num_heads
    x = y
    for l in range(num_layers):
        xp = x + pe[None]
        q = xp @ f32(params["wq"][l]) + params["bq"][l]
        k = xp @ f32(params["wk"][l]) + params["bk"][l]
        v = xp @ f32(params["wv"][l]) + params["bv"][l]
        q = q.reshape(B, S, num_heads, dh).transpose(0, 2, 1, 3)
        k = k.reshape(B, S, num_heads, dh).transpose(0, 2, 1, 3)
        v = v.reshape(B, S, num_heads, dh).transpose(0, 2, 1, 3)
        s = jnp.einsum("bhqd,bhkd->bhqk", q, k) / math.sqrt(dh) + mask
        pr = jax.nn.softmax(s, axis=-1)
        o = jnp.einsum("bhqk,bhkd->bhqd", pr, v).transpose(0, 2, 1, 3).reshape(B, S, D)
        o = o @ f32(params["wo"][l]) + params["bo"][l]
        x1 = ln(o + x, params["g1"][l], params["b1"][l])
        ff = (jax.nn.relu(x1 @ f32(params["w_ff1"][l]) + params["b_ff1"][l])
              @ f32(params["w_ff2"][l]) + params["b_ff2"][l])
        x = ln(ff + x1, params["g2"][l], params["b2"][l])
    return x @ f32(params["w_out"]) + params["b_out"]


# ----------------------------------------------------------------------------
if __name__ == "__main__":
    # batch, seq, d_model, heads, ffn_hidden, vocab, layers
    B, S, D, H, F, V, L = 2, 16, 128, 4, 256, 256, 2

    key = jax.random.PRNGKey(0)
    k_in, k_par = jax.random.split(key)

    y = jax.random.normal(k_in, (B, S, D), jnp.float32)
    # causal decoder mask, additive (0 where visible, large-negative where masked)
    decoder_mask = jnp.where(jnp.tril(jnp.ones((S, S), jnp.bool_)), 0.0, -1e9).astype(jnp.float32)
    pe = sinusoidal_pe(S, D)
    params = init_params(k_par, L, D, F, V)

    out = decoder_ape_forward(y, decoder_mask, pe, params, num_heads=H, num_layers=L)
    out = jax.block_until_ready(out)
    assert out.shape == (B, S, V), out.shape

    ref = reference_forward(y, decoder_mask, pe, params, num_heads=H, num_layers=L)
    # bf16 MXU inputs (f32 accumulation) -> compare with a relaxed relative tolerance
    rel_err = float(jnp.max(jnp.abs(out - ref)) / (jnp.max(jnp.abs(ref)) + 1e-6))
    assert rel_err < 5e-2, rel_err

    print("KERNEL_OK")
</pallas_src>

<mosaic_0001>
module attributes {stable_mosaic.version = 11 : i64} {
  func.func @decoder_stack_kernel(%arg0: i32, %arg1: i32, %arg2: memref<1x16x128xf32, #tpu.memory_space<vmem>>, %arg3: memref<16x128xf32, #tpu.memory_space<vmem>>, %arg4: memref<16x16xf32, #tpu.memory_space<vmem>>, %arg5: memref<1x128x128xbf16, #tpu.memory_space<vmem>>, %arg6: memref<1x128x128xbf16, #tpu.memory_space<vmem>>, %arg7: memref<1x128x128xbf16, #tpu.memory_space<vmem>>, %arg8: memref<1x1x128xf32, #tpu.memory_space<vmem>>, %arg9: memref<1x1x128xf32, #tpu.memory_space<vmem>>, %arg10: memref<1x1x128xf32, #tpu.memory_space<vmem>>, %arg11: memref<1x128x128xbf16, #tpu.memory_space<vmem>>, %arg12: memref<1x1x128xf32, #tpu.memory_space<vmem>>, %arg13: memref<1x1x128xf32, #tpu.memory_space<vmem>>, %arg14: memref<1x1x128xf32, #tpu.memory_space<vmem>>, %arg15: memref<1x128x256xbf16, #tpu.memory_space<vmem>>, %arg16: memref<1x1x256xf32, #tpu.memory_space<vmem>>, %arg17: memref<1x256x128xbf16, #tpu.memory_space<vmem>>, %arg18: memref<1x1x128xf32, #tpu.memory_space<vmem>>, %arg19: memref<1x1x128xf32, #tpu.memory_space<vmem>>, %arg20: memref<1x1x128xf32, #tpu.memory_space<vmem>>, %arg21: memref<1x16x128xf32, #tpu.memory_space<vmem>>, %arg22: memref<16x128xf32, #tpu.memory_space<vmem>>, %arg23: memref<16x128xf32, #tpu.memory_space<vmem>>) attributes {dimension_semantics = [#tpu.dimension_semantics<parallel>, #tpu.dimension_semantics<arbitrary>], iteration_bounds = array<i64: 2, 2>, scalar_prefetch = 0 : i64, scratch_operands = 2 : i64, tpu.core_type = #tpu.core_type<tc>, window_params = [{transform_indices = @transform_0, window_bounds = array<i64: 1, 16, 128>}, {pipeline_mode = #tpu.pipeline_mode<synchronous>, transform_indices = @transform_1, window_bounds = array<i64: 16, 128>}, {pipeline_mode = #tpu.pipeline_mode<synchronous>, transform_indices = @transform_2, window_bounds = array<i64: 16, 16>}, {transform_indices = @transform_3, window_bounds = array<i64: 1, 128, 128>}, {transform_indices = @transform_4, window_bounds = array<i64: 1, 128, 128>}, {transform_indices = @transform_5, window_bounds = array<i64: 1, 128, 128>}, {transform_indices = @transform_6, window_bounds = array<i64: 1, 1, 128>}, {transform_indices = @transform_7, window_bounds = array<i64: 1, 1, 128>}, {transform_indices = @transform_8, window_bounds = array<i64: 1, 1, 128>}, {transform_indices = @transform_9, window_bounds = array<i64: 1, 128, 128>}, {transform_indices = @transform_10, window_bounds = array<i64: 1, 1, 128>}, {transform_indices = @transform_11, window_bounds = array<i64: 1, 1, 128>}, {transform_indices = @transform_12, window_bounds = array<i64: 1, 1, 128>}, {transform_indices = @transform_13, window_bounds = array<i64: 1, 128, 256>}, {transform_indices = @transform_14, window_bounds = array<i64: 1, 1, 256>}, {transform_indices = @transform_15, window_bounds = array<i64: 1, 256, 128>}, {transform_indices = @transform_16, window_bounds = array<i64: 1, 1, 128>}, {transform_indices = @transform_17, window_bounds = array<i64: 1, 1, 128>}, {transform_indices = @transform_18, window_bounds = array<i64: 1, 1, 128>}, {transform_indices = @transform_19, window_bounds = array<i64: 1, 16, 128>}]} {
    %c0_i32 = arith.constant 0 : i32
    %0 = arith.cmpi eq, %arg1, %c0_i32 : i32
    %1 = arith.extui %0 : i1 to i32
    %c0_i32_0 = arith.constant 0 : i32
    %2 = arith.cmpi ne, %1, %c0_i32_0 : i32
    scf.if %2 {
      %c0_100 = arith.constant 0 : index
      %c0_101 = arith.constant 0 : index
      %c0_102 = arith.constant 0 : index
      %206 = vector.load %arg2[%c0_100, %c0_101, %c0_102] : memref<1x16x128xf32, #tpu.memory_space<vmem>>, vector<1x16x128xf32>
      %207 = vector.shape_cast %206 : vector<1x16x128xf32> to vector<16x128xf32>
      %c0_103 = arith.constant 0 : index
      %c0_104 = arith.constant 0 : index
      %208 = vector.load %arg22[%c0_103, %c0_104] : memref<16x128xf32, #tpu.memory_space<vmem>>, vector<16x128xf32>
      tpu.vector_store %arg22[%c0_103, %c0_104], %207 {strides = array<i32>} : memref<16x128xf32, #tpu.memory_space<vmem>>, vector<16x128xf32>,
    } else {
    }
    %c0 = arith.constant 0 : index
    %c0_1 = arith.constant 0 : index
    %3 = vector.load %arg22[%c0, %c0_1] : memref<16x128xf32, #tpu.memory_space<vmem>>, vector<16x128xf32>
    %c0_2 = arith.constant 0 : index
    %c0_3 = arith.constant 0 : index
    %4 = vector.load %arg3[%c0_2, %c0_3] : memref<16x128xf32, #tpu.memory_space<vmem>>, vector<16x128xf32>
    %c0_4 = arith.constant 0 : index
    %c0_5 = arith.constant 0 : index
    %5 = vector.load %arg4[%c0_4, %c0_5] : memref<16x16xf32, #tpu.memory_space<vmem>>, vector<16x16xf32>
    %6 = arith.addf %3, %4 : vector<16x128xf32>
    %7 = arith.truncf %6 : vector<16x128xf32> to vector<16x128xbf16>
    %c0_6 = arith.constant 0 : index
    %c0_7 = arith.constant 0 : index
    %c0_8 = arith.constant 0 : index
    %8 = vector.load %arg5[%c0_6, %c0_7, %c0_8] : memref<1x128x128xbf16, #tpu.memory_space<vmem>>, vector<1x128x128xbf16>
    %9 = vector.shape_cast %8 : vector<1x128x128xbf16> to vector<128x128xbf16>
    %cst = arith.constant dense<0.000000e+00> : vector<16x128xf32>
    %10 = tpu.matmul %7, %9, %cst {dimension_numbers = #tpu.dot_dimension_numbers<[1], [0], [0], [1], [0, 0, 1, 1], [], []>} : vector<16x128xbf16>, vector<128x128xbf16>, vector<16x128xf32> -> vector<16x128xf32>
    %c0_9 = arith.constant 0 : index
    %c0_10 = arith.constant 0 : index
    %c0_11 = arith.constant 0 : index
    %11 = vector.load %arg8[%c0_9, %c0_10, %c0_11] : memref<1x1x128xf32, #tpu.memory_space<vmem>>, vector<1x1x128xf32>
    %12 = vector.shape_cast %11 : vector<1x1x128xf32> to vector<1x128xf32>
    %13 = vector.broadcast %12 : vector<1x128xf32> to vector<16x128xf32>
    %14 = arith.addf %10, %13 : vector<16x128xf32>
    %c0_12 = arith.constant 0 : index
    %c0_13 = arith.constant 0 : index
    %c0_14 = arith.constant 0 : index
    %15 = vector.load %arg6[%c0_12, %c0_13, %c0_14] : memref<1x128x128xbf16, #tpu.memory_space<vmem>>, vector<1x128x128xbf16>
    %16 = vector.shape_cast %15 : vector<1x128x128xbf16> to vector<128x128xbf16>
    %cst_15 = arith.constant dense<0.000000e+00> : vector<16x128xf32>
    %17 = tpu.matmul %7, %16, %cst_15 {dimension_numbers = #tpu.dot_dimension_numbers<[1], [0], [0], [1], [0, 0, 1, 1], [], []>} : vector<16x128xbf16>, vector<128x128xbf16>, vector<16x128xf32> -> vector<16x128xf32>
    %c0_16 = arith.constant 0 : index
    %c0_17 = arith.constant 0 : index
    %c0_18 = arith.constant 0 : index
    %18 = vector.load %arg9[%c0_16, %c0_17, %c0_18] : memref<1x1x128xf32, #tpu.memory_space<vmem>>, vector<1x1x128xf32>
    %19 = vector.shape_cast %18 : vector<1x1x128xf32> to vector<1x128xf32>
    %20 = vector.broadcast %19 : vector<1x128xf32> to vector<16x128xf32>
    %21 = arith.addf %17, %20 : vector<16x128xf32>
    %c0_19 = arith.constant 0 : index
    %c0_20 = arith.constant 0 : index
    %c0_21 = arith.constant 0 : index
    %22 = vector.load %arg7[%c0_19, %c0_20, %c0_21] : memref<1x128x128xbf16, #tpu.memory_space<vmem>>, vector<1x128x128xbf16>
    %23 = vector.shape_cast %22 : vector<1x128x128xbf16> to vector<128x128xbf16>
    %cst_22 = arith.constant dense<0.000000e+00> : vector<16x128xf32>
    %24 = tpu.matmul %7, %23, %cst_22 {dimension_numbers = #tpu.dot_dimension_numbers<[1], [0], [0], [1], [0, 0, 1, 1], [], []>} : vector<16x128xbf16>, vector<128x128xbf16>, vector<16x128xf32> -> vector<16x128xf32>
    %c0_23 = arith.constant 0 : index
    %c0_24 = arith.constant 0 : index
    %c0_25 = arith.constant 0 : index
    %25 = vector.load %arg10[%c0_23, %c0_24, %c0_25] : memref<1x1x128xf32, #tpu.memory_space<vmem>>, vector<1x1x128xf32>
    %26 = vector.shape_cast %25 : vector<1x1x128xf32> to vector<1x128xf32>
    %27 = vector.broadcast %26 : vector<1x128xf32> to vector<16x128xf32>
    %28 = arith.addf %24, %27 : vector<16x128xf32>
    %29 = vector.extract_strided_slice %14 {offsets = [0, 0], sizes = [16, 32], strides = [1, 1]} : vector<16x128xf32> to vector<16x32xf32>
    %30 = arith.truncf %29 : vector<16x32xf32> to vector<16x32xbf16>
    %31 = vector.extract_strided_slice %21 {offsets = [0, 0], sizes = [16, 32], strides = [1, 1]} : vector<16x128xf32> to vector<16x32xf32>
    %32 = arith.truncf %31 : vector<16x32xf32> to vector<16x32xbf16>
    %33 = vector.extract_strided_slice %28 {offsets = [0, 0], sizes = [16, 32], strides = [1, 1]} : vector<16x128xf32> to vector<16x32xf32>
    %34 = arith.truncf %33 : vector<16x32xf32> to vector<16x32xbf16>
    %cst_26 = arith.constant dense<0.000000e+00> : vector<16x16xf32>
    %35 = tpu.matmul %30, %32, %cst_26 {dimension_numbers = #tpu.dot_dimension_numbers<[1], [1], [0], [0], [0, 0, 1, 0], [], []>} : vector<16x32xbf16>, vector<16x32xbf16>, vector<16x16xf32> -> vector<16x16xf32>
    %cst_27 = arith.constant 0.176776692 : f32
    %36 = vector.broadcast %cst_27 : f32 to vector<16x16xf32>
    %37 = arith.mulf %35, %36 : vector<16x16xf32>
    %38 = arith.addf %37, %5 : vector<16x16xf32>
    %cst_28 = arith.constant dense<0xFF800000> : vector<16xf32>
    %39 = vector.multi_reduction <maximumf>, %38, %cst_28 [1] : vector<16x16xf32> to vector<16xf32>
    %40 = vector.shape_cast %39 : vector<16xf32> to vector<16x1xf32>
    %41 = vector.broadcast %40 : vector<16x1xf32> to vector<16x16xf32>
    %42 = arith.subf %38, %41 : vector<16x16xf32>
    %43 = math.exp %42 : vector<16x16xf32>
    %cst_29 = arith.constant dense<0.000000e+00> : vector<16xf32>
    %44 = vector.multi_reduction <add>, %43, %cst_29 [1] : vector<16x16xf32> to vector<16xf32>
    %45 = vector.shape_cast %44 : vector<16xf32> to vector<16x1xf32>
    %46 = arith.truncf %43 : vector<16x16xf32> to vector<16x16xbf16>
    %cst_30 = arith.constant dense<0.000000e+00> : vector<16x32xf32>
    %47 = tpu.matmul %46, %34, %cst_30 {dimension_numbers = #tpu.dot_dimension_numbers<[1], [0], [0], [1], [0, 0, 1, 1], [], []>} : vector<16x16xbf16>, vector<16x32xbf16>, vector<16x32xf32> -> vector<16x32xf32>
    %48 = tpu.reciprocal %45 {approx = true} : vector<16x1xf32> -> vector<16x1xf32>
    %49 = vector.broadcast %48 : vector<16x1xf32> to vector<16x32xf32>
    %50 = arith.mulf %47, %49 : vector<16x32xf32>
    %c0_31 = arith.constant 0 : index
    %c0_32 = arith.constant 0 : index
    %51 = vector.load %arg23[%c0_31, %c0_32] : memref<16x128xf32, #tpu.memory_space<vmem>>, vector<16x32xf32>
    tpu.vector_store %arg23[%c0_31, %c0_32], %50 {strides = array<i32>} : memref<16x128xf32, #tpu.memory_space<vmem>>, vector<16x32xf32>,
    %52 = vector.extract_strided_slice %14 {offsets = [0, 32], sizes = [16, 32], strides = [1, 1]} : vector<16x128xf32> to vector<16x32xf32>
    %53 = arith.truncf %52 : vector<16x32xf32> to vector<16x32xbf16>
    %54 = vector.extract_strided_slice %21 {offsets = [0, 32], sizes = [16, 32], strides = [1, 1]} : vector<16x128xf32> to vector<16x32xf32>
    %55 = arith.truncf %54 : vector<16x32xf32> to vector<16x32xbf16>
    %56 = vector.extract_strided_slice %28 {offsets = [0, 32], sizes = [16, 32], strides = [1, 1]} : vector<16x128xf32> to vector<16x32xf32>
    %57 = arith.truncf %56 : vector<16x32xf32> to vector<16x32xbf16>
    %cst_33 = arith.constant dense<0.000000e+00> : vector<16x16xf32>
    %58 = tpu.matmul %53, %55, %cst_33 {dimension_numbers = #tpu.dot_dimension_numbers<[1], [1], [0], [0], [0, 0, 1, 0], [], []>} : vector<16x32xbf16>, vector<16x32xbf16>, vector<16x16xf32> -> vector<16x16xf32>
    %cst_34 = arith.constant 0.176776692 : f32
    %59 = vector.broadcast %cst_34 : f32 to vector<16x16xf32>
    %60 = arith.mulf %58, %59 : vector<16x16xf32>
    %61 = arith.addf %60, %5 : vector<16x16xf32>
    %cst_35 = arith.constant dense<0xFF800000> : vector<16xf32>
    %62 = vector.multi_reduction <maximumf>, %61, %cst_35 [1] : vector<16x16xf32> to vector<16xf32>
    %63 = vector.shape_cast %62 : vector<16xf32> to vector<16x1xf32>
    %64 = vector.broadcast %63 : vector<16x1xf32> to vector<16x16xf32>
    %65 = arith.subf %61, %64 : vector<16x16xf32>
    %66 = math.exp %65 : vector<16x16xf32>
    %cst_36 = arith.constant dense<0.000000e+00> : vector<16xf32>
    %67 = vector.multi_reduction <add>, %66, %cst_36 [1] : vector<16x16xf32> to vector<16xf32>
    %68 = vector.shape_cast %67 : vector<16xf32> to vector<16x1xf32>
    %69 = arith.truncf %66 : vector<16x16xf32> to vector<16x16xbf16>
    %cst_37 = arith.constant dense<0.000000e+00> : vector<16x32xf32>
    %70 = tpu.matmul %69, %57, %cst_37 {dimension_numbers = #tpu.dot_dimension_numbers<[1], [0], [0], [1], [0, 0, 1, 1], [], []>} : vector<16x16xbf16>, vector<16x32xbf16>, vector<16x32xf32> -> vector<16x32xf32>
    %71 = tpu.reciprocal %68 {approx = true} : vector<16x1xf32> -> vector<16x1xf32>
    %72 = vector.broadcast %71 : vector<16x1xf32> to vector<16x32xf32>
    %73 = arith.mulf %70, %72 : vector<16x32xf32>
    %c0_38 = arith.constant 0 : index
    %c32 = arith.constant 32 : index
    %74 = vector.load %arg23[%c0_38, %c32] : memref<16x128xf32, #tpu.memory_space<vmem>>, vector<16x32xf32>
    tpu.vector_store %arg23[%c0_38, %c32], %73 {strides = array<i32>} : memref<16x128xf32, #tpu.memory_space<vmem>>, vector<16x32xf32>,
    %75 = vector.extract_strided_slice %14 {offsets = [0, 64], sizes = [16, 32], strides = [1, 1]} : vector<16x128xf32> to vector<16x32xf32>
    %76 = arith.truncf %75 : vector<16x32xf32> to vector<16x32xbf16>
    %77 = vector.extract_strided_slice %21 {offsets = [0, 64], sizes = [16, 32], strides = [1, 1]} : vector<16x128xf32> to vector<16x32xf32>
    %78 = arith.truncf %77 : vector<16x32xf32> to vector<16x32xbf16>
    %79 = vector.extract_strided_slice %28 {offsets = [0, 64], sizes = [16, 32], strides = [1, 1]} : vector<16x128xf32> to vector<16x32xf32>
    %80 = arith.truncf %79 : vector<16x32xf32> to vector<16x32xbf16>
    %cst_39 = arith.constant dense<0.000000e+00> : vector<16x16xf32>
    %81 = tpu.matmul %76, %78, %cst_39 {dimension_numbers = #tpu.dot_dimension_numbers<[1], [1], [0], [0], [0, 0, 1, 0], [], []>} : vector<16x32xbf16>, vector<16x32xbf16>, vector<16x16xf32> -> vector<16x16xf32>
    %cst_40 = arith.constant 0.176776692 : f32
    %82 = vector.broadcast %cst_40 : f32 to vector<16x16xf32>
    %83 = arith.mulf %81, %82 : vector<16x16xf32>
    %84 = arith.addf %83, %5 : vector<16x16xf32>
    %cst_41 = arith.constant dense<0xFF800000> : vector<16xf32>
    %85 = vector.multi_reduction <maximumf>, %84, %cst_41 [1] : vector<16x16xf32> to vector<16xf32>
    %86 = vector.shape_cast %85 : vector<16xf32> to vector<16x1xf32>
    %87 = vector.broadcast %86 : vector<16x1xf32> to vector<16x16xf32>
    %88 = arith.subf %84, %87 : vector<16x16xf32>
    %89 = math.exp %88 : vector<16x16xf32>
    %cst_42 = arith.constant dense<0.000000e+00> : vector<16xf32>
    %90 = vector.multi_reduction <add>, %89, %cst_42 [1] : vector<16x16xf32> to vector<16xf32>
    %91 = vector.shape_cast %90 : vector<16xf32> to vector<16x1xf32>
    %92 = arith.truncf %89 : vector<16x16xf32> to vector<16x16xbf16>
    %cst_43 = arith.constant dense<0.000000e+00> : vector<16x32xf32>
    %93 = tpu.matmul %92, %80, %cst_43 {dimension_numbers = #tpu.dot_dimension_numbers<[1], [0], [0], [1], [0, 0, 1, 1], [], []>} : vector<16x16xbf16>, vector<16x32xbf16>, vector<16x32xf32> -> vector<16x32xf32>
    %94 = tpu.reciprocal %91 {approx = true} : vector<16x1xf32> -> vector<16x1xf32>
    %95 = vector.broadcast %94 : vector<16x1xf32> to vector<16x32xf32>
    %96 = arith.mulf %93, %95 : vector<16x32xf32>
    %c0_44 = arith.constant 0 : index
    %c64 = arith.constant 64 : index
    %97 = vector.load %arg23[%c0_44, %c64] : memref<16x128xf32, #tpu.memory_space<vmem>>, vector<16x32xf32>
    tpu.vector_store %arg23[%c0_44, %c64], %96 {strides = array<i32>} : memref<16x128xf32, #tpu.memory_space<vmem>>, vector<16x32xf32>,
    %98 = vector.extract_strided_slice %14 {offsets = [0, 96], sizes = [16, 32], strides = [1, 1]} : vector<16x128xf32> to vector<16x32xf32>
    %99 = arith.truncf %98 : vector<16x32xf32> to vector<16x32xbf16>
    %100 = vector.extract_strided_slice %21 {offsets = [0, 96], sizes = [16, 32], strides = [1, 1]} : vector<16x128xf32> to vector<16x32xf32>
    %101 = arith.truncf %100 : vector<16x32xf32> to vector<16x32xbf16>
    %102 = vector.extract_strided_slice %28 {offsets = [0, 96], sizes = [16, 32], strides = [1, 1]} : vector<16x128xf32> to vector<16x32xf32>
    %103 = arith.truncf %102 : vector<16x32xf32> to vector<16x32xbf16>
    %cst_45 = arith.constant dense<0.000000e+00> : vector<16x16xf32>
    %104 = tpu.matmul %99, %101, %cst_45 {dimension_numbers = #tpu.dot_dimension_numbers<[1], [1], [0], [0], [0, 0, 1, 0], [], []>} : vector<16x32xbf16>, vector<16x32xbf16>, vector<16x16xf32> -> vector<16x16xf32>
    %cst_46 = arith.constant 0.176776692 : f32
    %105 = vector.broadcast %cst_46 : f32 to vector<16x16xf32>
    %106 = arith.mulf %104, %105 : vector<16x16xf32>
    %107 = arith.addf %106, %5 : vector<16x16xf32>
    %cst_47 = arith.constant dense<0xFF800000> : vector<16xf32>
    %108 = vector.multi_reduction <maximumf>, %107, %cst_47 [1] : vector<16x16xf32> to vector<16xf32>
    %109 = vector.shape_cast %108 : vector<16xf32> to vector<16x1xf32>
    %110 = vector.broadcast %109 : vector<16x1xf32> to vector<16x16xf32>
    %111 = arith.subf %107, %110 : vector<16x16xf32>
    %112 = math.exp %111 : vector<16x16xf32>
    %cst_48 = arith.constant dense<0.000000e+00> : vector<16xf32>
    %113 = vector.multi_reduction <add>, %112, %cst_48 [1] : vector<16x16xf32> to vector<16xf32>
    %114 = vector.shape_cast %113 : vector<16xf32> to vector<16x1xf32>
    %115 = arith.truncf %112 : vector<16x16xf32> to vector<16x16xbf16>
    %cst_49 = arith.constant dense<0.000000e+00> : vector<16x32xf32>
    %116 = tpu.matmul %115, %103, %cst_49 {dimension_numbers = #tpu.dot_dimension_numbers<[1], [0], [0], [1], [0, 0, 1, 1], [], []>} : vector<16x16xbf16>, vector<16x32xbf16>, vector<16x32xf32> -> vector<16x32xf32>
    %117 = tpu.reciprocal %114 {approx = true} : vector<16x1xf32> -> vector<16x1xf32>
    %118 = vector.broadcast %117 : vector<16x1xf32> to vector<16x32xf32>
    %119 = arith.mulf %116, %118 : vector<16x32xf32>
    %c0_50 = arith.constant 0 : index
    %c96 = arith.constant 96 : index
    %120 = vector.load %arg23[%c0_50, %c96] : memref<16x128xf32, #tpu.memory_space<vmem>>, vector<16x32xf32>
    tpu.vector_store %arg23[%c0_50, %c96], %119 {strides = array<i32>} : memref<16x128xf32, #tpu.memory_space<vmem>>, vector<16x32xf32>,
    %c0_51 = arith.constant 0 : index
    %c0_52 = arith.constant 0 : index
    %121 = vector.load %arg23[%c0_51, %c0_52] : memref<16x128xf32, #tpu.memory_space<vmem>>, vector<16x128xf32>
    %122 = arith.truncf %121 : vector<16x128xf32> to vector<16x128xbf16>
    %c0_53 = arith.constant 0 : index
    %c0_54 = arith.constant 0 : index
    %c0_55 = arith.constant 0 : index
    %123 = vector.load %arg11[%c0_53, %c0_54, %c0_55] : memref<1x128x128xbf16, #tpu.memory_space<vmem>>, vector<1x128x128xbf16>
    %124 = vector.shape_cast %123 : vector<1x128x128xbf16> to vector<128x128xbf16>
    %cst_56 = arith.constant dense<0.000000e+00> : vector<16x128xf32>
    %125 = tpu.matmul %122, %124, %cst_56 {dimension_numbers = #tpu.dot_dimension_numbers<[1], [0], [0], [1], [0, 0, 1, 1], [], []>} : vector<16x128xbf16>, vector<128x128xbf16>, vector<16x128xf32> -> vector<16x128xf32>
    %c0_57 = arith.constant 0 : index
    %c0_58 = arith.constant 0 : index
    %c0_59 = arith.constant 0 : index
    %126 = vector.load %arg12[%c0_57, %c0_58, %c0_59] : memref<1x1x128xf32, #tpu.memory_space<vmem>>, vector<1x1x128xf32>
    %127 = vector.shape_cast %126 : vector<1x1x128xf32> to vector<1x128xf32>
    %128 = vector.broadcast %127 : vector<1x128xf32> to vector<16x128xf32>
    %129 = arith.addf %125, %128 : vector<16x128xf32>
    %130 = arith.addf %129, %3 : vector<16x128xf32>
    %c0_60 = arith.constant 0 : index
    %c0_61 = arith.constant 0 : index
    %c0_62 = arith.constant 0 : index
    %131 = vector.load %arg13[%c0_60, %c0_61, %c0_62] : memref<1x1x128xf32, #tpu.memory_space<vmem>>, vector<1x1x128xf32>
    %132 = vector.shape_cast %131 : vector<1x1x128xf32> to vector<1x128xf32>
    %c0_63 = arith.constant 0 : index
    %c0_64 = arith.constant 0 : index
    %c0_65 = arith.constant 0 : index
    %133 = vector.load %arg14[%c0_63, %c0_64, %c0_65] : memref<1x1x128xf32, #tpu.memory_space<vmem>>, vector<1x1x128xf32>
    %134 = vector.shape_cast %133 : vector<1x1x128xf32> to vector<1x128xf32>
    %cst_66 = arith.constant dense<0.000000e+00> : vector<16xf32>
    %135 = vector.multi_reduction <add>, %130, %cst_66 [1] : vector<16x128xf32> to vector<16xf32>
    %136 = vector.shape_cast %135 : vector<16xf32> to vector<16x1xf32>
    %cst_67 = arith.constant 1.280000e+02 : f32
    %137 = vector.broadcast %cst_67 : f32 to vector<16x1xf32>
    %138 = arith.divf %136, %137 : vector<16x1xf32>
    %139 = vector.broadcast %138 : vector<16x1xf32> to vector<16x128xf32>
    %140 = arith.subf %130, %139 : vector<16x128xf32>
    %141 = arith.mulf %140, %140 : vector<16x128xf32>
    %cst_68 = arith.constant dense<0.000000e+00> : vector<16xf32>
    %142 = vector.multi_reduction <add>, %141, %cst_68 [1] : vector<16x128xf32> to vector<16xf32>
    %143 = vector.shape_cast %142 : vector<16xf32> to vector<16x1xf32>
    %cst_69 = arith.constant 1.280000e+02 : f32
    %144 = vector.broadcast %cst_69 : f32 to vector<16x1xf32>
    %145 = arith.divf %143, %144 : vector<16x1xf32>
    %146 = vector.broadcast %138 : vector<16x1xf32> to vector<16x128xf32>
    %147 = arith.subf %130, %146 : vector<16x128xf32>
    %148 = vector.broadcast %132 : vector<1x128xf32> to vector<16x128xf32>
    %149 = arith.mulf %148, %147 : vector<16x128xf32>
    %cst_70 = arith.constant 9.99999974E-6 : f32
    %150 = vector.broadcast %cst_70 : f32 to vector<16x1xf32>
    %151 = arith.addf %145, %150 : vector<16x1xf32>
    %152 = math.sqrt %151 : vector<16x1xf32>
    %153 = vector.broadcast %152 : vector<16x1xf32> to vector<16x128xf32>
    %154 = arith.divf %149, %153 : vector<16x128xf32>
    %155 = vector.broadcast %134 : vector<1x128xf32> to vector<16x128xf32>
    %156 = arith.addf %154, %155 : vector<16x128xf32>
    %157 = arith.truncf %156 : vector<16x128xf32> to vector<16x128xbf16>
    %c0_71 = arith.constant 0 : index
    %c0_72 = arith.constant 0 : index
    %c0_73 = arith.constant 0 : index
    %158 = vector.load %arg15[%c0_71, %c0_72, %c0_73] : memref<1x128x256xbf16, #tpu.memory_space<vmem>>, vector<1x128x256xbf16>
    %159 = vector.shape_cast %158 : vector<1x128x256xbf16> to vector<128x256xbf16>
    %cst_74 = arith.constant dense<0.000000e+00> : vector<16x256xf32>
    %160 = tpu.matmul %157, %159, %cst_74 {dimension_numbers = #tpu.dot_dimension_numbers<[1], [0], [0], [1], [0, 0, 1, 1], [], []>} : vector<16x128xbf16>, vector<128x256xbf16>, vector<16x256xf32> -> vector<16x256xf32>
    %c0_75 = arith.constant 0 : index
    %c0_76 = arith.constant 0 : index
    %c0_77 = arith.constant 0 : index
    %161 = vector.load %arg16[%c0_75, %c0_76, %c0_77] : memref<1x1x256xf32, #tpu.memory_space<vmem>>, vector<1x1x256xf32>
    %162 = vector.shape_cast %161 : vector<1x1x256xf32> to vector<1x256xf32>
    %163 = vector.broadcast %162 : vector<1x256xf32> to vector<16x256xf32>
    %164 = arith.addf %160, %163 : vector<16x256xf32>
    %cst_78 = arith.constant 0.000000e+00 : f32
    %165 = vector.broadcast %cst_78 : f32 to vector<16x256xf32>
    %166 = arith.maximumf %164, %165 : vector<16x256xf32>
    %167 = arith.truncf %166 : vector<16x256xf32> to vector<16x256xbf16>
    %c0_79 = arith.constant 0 : index
    %c0_80 = arith.constant 0 : index
    %c0_81 = arith.constant 0 : index
    %168 = vector.load %arg17[%c0_79, %c0_80, %c0_81] : memref<1x256x128xbf16, #tpu.memory_space<vmem>>, vector<1x256x128xbf16>
    %169 = vector.shape_cast %168 : vector<1x256x128xbf16> to vector<256x128xbf16>
    %cst_82 = arith.constant dense<0.000000e+00> : vector<16x128xf32>
    %170 = tpu.matmul %167, %169, %cst_82 {dimension_numbers = #tpu.dot_dimension_numbers<[1], [0], [0], [1], [0, 0, 1, 1], [], []>} : vector<16x256xbf16>, vector<256x128xbf16>, vector<16x128xf32> -> vector<16x128xf32>
    %c0_83 = arith.constant 0 : index
    %c0_84 = arith.constant 0 : index
    %c0_85 = arith.constant 0 : index
    %171 = vector.load %arg18[%c0_83, %c0_84, %c0_85] : memref<1x1x128xf32, #tpu.memory_space<vmem>>, vector<1x1x128xf32>
    %172 = vector.shape_cast %171 : vector<1x1x128xf32> to vector<1x128xf32>
    %173 = vector.broadcast %172 : vector<1x128xf32> to vector<16x128xf32>
    %174 = arith.addf %170, %173 : vector<16x128xf32>
    %175 = arith.addf %174, %156 : vector<16x128xf32>
    %c0_86 = arith.constant 0 : index
    %c0_87 = arith.constant 0 : index
    %c0_88 = arith.constant 0 : index
    %176 = vector.load %arg19[%c0_86, %c0_87, %c0_88] : memref<1x1x128xf32, #tpu.memory_space<vmem>>, vector<1x1x128xf32>
    %177 = vector.shape_cast %176 : vector<1x1x128xf32> to vector<1x128xf32>
    %c0_89 = arith.constant 0 : index
    %c0_90 = arith.constant 0 : index
    %c0_91 = arith.constant 0 : index
    %178 = vector.load %arg20[%c0_89, %c0_90, %c0_91] : memref<1x1x128xf32, #tpu.memory_space<vmem>>, vector<1x1x128xf32>
    %179 = vector.shape_cast %178 : vector<1x1x128xf32> to vector<1x128xf32>
    %cst_92 = arith.constant dense<0.000000e+00> : vector<16xf32>
    %180 = vector.multi_reduction <add>, %175, %cst_92 [1] : vector<16x128xf32> to vector<16xf32>
    %181 = vector.shape_cast %180 : vector<16xf32> to vector<16x1xf32>
    %cst_93 = arith.constant 1.280000e+02 : f32
    %182 = vector.broadcast %cst_93 : f32 to vector<16x1xf32>
    %183 = arith.divf %181, %182 : vector<16x1xf32>
    %184 = vector.broadcast %183 : vector<16x1xf32> to vector<16x128xf32>
    %185 = arith.subf %175, %184 : vector<16x128xf32>
    %186 = arith.mulf %185, %185 : vector<16x128xf32>
    %cst_94 = arith.constant dense<0.000000e+00> : vector<16xf32>
    %187 = vector.multi_reduction <add>, %186, %cst_94 [1] : vector<16x128xf32> to vector<16xf32>
    %188 = vector.shape_cast %187 : vector<16xf32> to vector<16x1xf32>
    %cst_95 = arith.constant 1.280000e+02 : f32
    %189 = vector.broadcast %cst_95 : f32 to vector<16x1xf32>
    %190 = arith.divf %188, %189 : vector<16x1xf32>
    %191 = vector.broadcast %183 : vector<16x1xf32> to vector<16x128xf32>
    %192 = arith.subf %175, %191 : vector<16x128xf32>
    %193 = vector.broadcast %177 : vector<1x128xf32> to vector<16x128xf32>
    %194 = arith.mulf %193, %192 : vector<16x128xf32>
    %cst_96 = arith.constant 9.99999974E-6 : f32
    %195 = vector.broadcast %cst_96 : f32 to vector<16x1xf32>
    %196 = arith.addf %190, %195 : vector<16x1xf32>
    %197 = math.sqrt %196 : vector<16x1xf32>
    %198 = vector.broadcast %197 : vector<16x1xf32> to vector<16x128xf32>
    %199 = arith.divf %194, %198 : vector<16x128xf32>
    %200 = vector.broadcast %179 : vector<1x128xf32> to vector<16x128xf32>
    %201 = arith.addf %199, %200 : vector<16x128xf32>
    %c0_97 = arith.constant 0 : index
    %c0_98 = arith.constant 0 : index
    %202 = vector.load %arg22[%c0_97, %c0_98] : memref<16x128xf32, #tpu.memory_space<vmem>>, vector<16x128xf32>
    tpu.vector_store %arg22[%c0_97, %c0_98], %201 {strides = array<i32>} : memref<16x128xf32, #tpu.memory_space<vmem>>, vector<16x128xf32>,
    %c1_i32 = arith.constant 1 : i32
    %203 = arith.cmpi eq, %arg1, %c1_i32 : i32
    %204 = arith.extui %203 : i1 to i32
    %c0_i32_99 = arith.constant 0 : i32
    %205 = arith.cmpi ne, %204, %c0_i32_99 : i32
    scf.if %205 {
      %c0_100 = arith.constant 0 : index
      %c0_101 = arith.constant 0 : index
      %c0_102 = arith.constant 0 : index
      %206 = vector.load %arg21[%c0_100, %c0_101, %c0_102] : memref<1x16x128xf32, #tpu.memory_space<vmem>>, vector<1x16x128xf32>
      %207 = vector.shape_cast %206 : vector<1x16x128xf32> to vector<16x128xf32>
      %208 = vector.shape_cast %201 : vector<16x128xf32> to vector<1x16x128xf32>
      tpu.vector_store %arg21[%c0_100, %c0_101, %c0_102], %208 {strides = array<i32>} : memref<1x16x128xf32, #tpu.memory_space<vmem>>, vector<1x16x128xf32>,
    } else {
    }
    return
  }
  func.func @transform_0(%arg0: i32, %arg1: i32) -> (i32, i32, i32) {
    %c0_i32 = arith.constant 0 : i32
    %c0_i32_0 = arith.constant 0 : i32
    %c0_i32_1 = arith.constant 0 : i32
    return %arg0, %c0_i32, %c0_i32_0 : i32, i32, i32
  }
  func.func @transform_1(%arg0: i32, %arg1: i32) -> (i32, i32) {
    %c0_i32 = arith.constant 0 : i32
    %c0_i32_0 = arith.constant 0 : i32
    %c0_i32_1 = arith.constant 0 : i32
    return %c0_i32, %c0_i32_0 : i32, i32
  }
  func.func @transform_2(%arg0: i32, %arg1: i32) -> (i32, i32) {
    %c0_i32 = arith.constant 0 : i32
    %c0_i32_0 = arith.constant 0 : i32
    %c0_i32_1 = arith.constant 0 : i32
    return %c0_i32, %c0_i32_0 : i32, i32
  }
  func.func @transform_3(%arg0: i32, %arg1: i32) -> (i32, i32, i32) {
    %c0_i32 = arith.constant 0 : i32
    %c0_i32_0 = arith.constant 0 : i32
    %c0_i32_1 = arith.constant 0 : i32
    return %arg1, %c0_i32, %c0_i32_0 : i32, i32, i32
  }
  func.func @transform_4(%arg0: i32, %arg1: i32) -> (i32, i32, i32) {
    %c0_i32 = arith.constant 0 : i32
    %c0_i32_0 = arith.constant 0 : i32
    %c0_i32_1 = arith.constant 0 : i32
    return %arg1, %c0_i32, %c0_i32_0 : i32, i32, i32
  }
  func.func @transform_5(%arg0: i32, %arg1: i32) -> (i32, i32, i32) {
    %c0_i32 = arith.constant 0 : i32
    %c0_i32_0 = arith.constant 0 : i32
    %c0_i32_1 = arith.constant 0 : i32
    return %arg1, %c0_i32, %c0_i32_0 : i32, i32, i32
  }
  func.func @transform_6(%arg0: i32, %arg1: i32) -> (i32, i32, i32) {
    %c0_i32 = arith.constant 0 : i32
    %c0_i32_0 = arith.constant 0 : i32
    %c0_i32_1 = arith.constant 0 : i32
    return %arg1, %c0_i32, %c0_i32_0 : i32, i32, i32
  }
  func.func @transform_7(%arg0: i32, %arg1: i32) -> (i32, i32, i32) {
    %c0_i32 = arith.constant 0 : i32
    %c0_i32_0 = arith.constant 0 : i32
    %c0_i32_1 = arith.constant 0 : i32
    return %arg1, %c0_i32, %c0_i32_0 : i32, i32, i32
  }
  func.func @transform_8(%arg0: i32, %arg1: i32) -> (i32, i32, i32) {
    %c0_i32 = arith.constant 0 : i32
    %c0_i32_0 = arith.constant 0 : i32
    %c0_i32_1 = arith.constant 0 : i32
    return %arg1, %c0_i32, %c0_i32_0 : i32, i32, i32
  }
  func.func @transform_9(%arg0: i32, %arg1: i32) -> (i32, i32, i32) {
    %c0_i32 = arith.constant 0 : i32
    %c0_i32_0 = arith.constant 0 : i32
    %c0_i32_1 = arith.constant 0 : i32
    return %arg1, %c0_i32, %c0_i32_0 : i32, i32, i32
  }
  func.func @transform_10(%arg0: i32, %arg1: i32) -> (i32, i32, i32) {
    %c0_i32 = arith.constant 0 : i32
    %c0_i32_0 = arith.constant 0 : i32
    %c0_i32_1 = arith.constant 0 : i32
    return %arg1, %c0_i32, %c0_i32_0 : i32, i32, i32
  }
  func.func @transform_11(%arg0: i32, %arg1: i32) -> (i32, i32, i32) {
    %c0_i32 = arith.constant 0 : i32
    %c0_i32_0 = arith.constant 0 : i32
    %c0_i32_1 = arith.constant 0 : i32
    return %arg1, %c0_i32, %c0_i32_0 : i32, i32, i32
  }
  func.func @transform_12(%arg0: i32, %arg1: i32) -> (i32, i32, i32) {
    %c0_i32 = arith.constant 0 : i32
    %c0_i32_0 = arith.constant 0 : i32
    %c0_i32_1 = arith.constant 0 : i32
    return %arg1, %c0_i32, %c0_i32_0 : i32, i32, i32
  }
  func.func @transform_13(%arg0: i32, %arg1: i32) -> (i32, i32, i32) {
    %c0_i32 = arith.constant 0 : i32
    %c0_i32_0 = arith.constant 0 : i32
    %c0_i32_1 = arith.constant 0 : i32
    return %arg1, %c0_i32, %c0_i32_0 : i32, i32, i32
  }
  func.func @transform_14(%arg0: i32, %arg1: i32) -> (i32, i32, i32) {
    %c0_i32 = arith.constant 0 : i32
    %c0_i32_0 = arith.constant 0 : i32
    %c0_i32_1 = arith.constant 0 : i32
    return %arg1, %c0_i32, %c0_i32_0 : i32, i32, i32
  }
  func.func @transform_15(%arg0: i32, %arg1: i32) -> (i32, i32, i32) {
    %c0_i32 = arith.constant 0 : i32
    %c0_i32_0 = arith.constant 0 : i32
    %c0_i32_1 = arith.constant 0 : i32
    return %arg1, %c0_i32, %c0_i32_0 : i32, i32, i32
  }
  func.func @transform_16(%arg0: i32, %arg1: i32) -> (i32, i32, i32) {
    %c0_i32 = arith.constant 0 : i32
    %c0_i32_0 = arith.constant 0 : i32
    %c0_i32_1 = arith.constant 0 : i32
    return %arg1, %c0_i32, %c0_i32_0 : i32, i32, i32
  }
  func.func @transform_17(%arg0: i32, %arg1: i32) -> (i32, i32, i32) {
    %c0_i32 = arith.constant 0 : i32
    %c0_i32_0 = arith.constant 0 : i32
    %c0_i32_1 = arith.constant 0 : i32
    return %arg1, %c0_i32, %c0_i32_0 : i32, i32, i32
  }
  func.func @transform_18(%arg0: i32, %arg1: i32) -> (i32, i32, i32) {
    %c0_i32 = arith.constant 0 : i32
    %c0_i32_0 = arith.constant 0 : i32
    %c0_i32_1 = arith.constant 0 : i32
    return %arg1, %c0_i32, %c0_i32_0 : i32, i32, i32
  }
  func.func @transform_19(%arg0: i32, %arg1: i32) -> (i32, i32, i32) {
    %c0_i32 = arith.constant 0 : i32
    %c0_i32_0 = arith.constant 0 : i32
    %c0_i32_1 = arith.constant 0 : i32
    return %arg0, %c0_i32, %c0_i32_0 : i32, i32, i32
  }
}

</mosaic_0001>

<bundles_post_ra>
// kernel: tpu_custom_call.1
= control target key start
LH: loop header
LB: loop body
LE: loop exit
PB: predicated region body
PF: predicated region fallthrough
CT: control target
= control target key end

     0   :  { %s4540_s0 = inlined_call_operand.hbm [shape: f32[2,16,128], index: 0, kind: input, shape index: {}]   ;;  %s4541_s1 = inlined_call_operand.hbm [shape: f32[16,128], index: 1, kind: input, shape index: {}]   ;;  %s4542_s2 = inlined_call_operand.hbm [shape: f32[16,16], index: 2, kind: input, shape index: {}]   ;;  %s4543_s3 = inlined_call_operand.hbm [shape: bf16[2,128,128], index: 3, kind: input, shape index: {}]   ;;  %s4544_s4 = inlined_call_operand.hbm [shape: bf16[2,128,128], index: 4, kind: input, shape index: {}]   ;;  %s4545_s5 = inlined_call_operand.hbm [shape: bf16[2,128,128], index: 5, kind: input, shape index: {}]   ;;  %s4546_s6 = inlined_call_operand.vmem [shape: f32[2,1,128], index: 6, kind: input, shape index: {}]   ;;  %s4547_s7 = inlined_call_operand.hbm [shape: f32[2,1,128], index: 7, kind: input, shape index: {}]   ;;  %s4548_s8 = inlined_call_operand.hbm [shape: f32[2,1,128], index: 8, kind: input, shape index: {}]   ;;  %s4549_s9 = inlined_call_operand.hbm [shape: bf16[2,128,128], index: 9, kind: input, shape index: {}]   ;;  %s4550_s10 = inlined_call_operand.vmem [shape: f32[2,1,128], index: 10, kind: input, shape index: {}]   ;;  %s4551_s11 = inlined_call_operand.vmem [shape: f32[2,1,128], index: 11, kind: input, shape index: {}]   ;;  %s4552_s12 = inlined_call_operand.hbm [shape: f32[2,1,128], index: 12, kind: input, shape index: {}]   ;;  %s4553_s13 = inlined_call_operand.hbm [shape: bf16[2,128,256], index: 13, kind: input, shape index: {}]   ;;  %s4554_s14 = inlined_call_operand.vmem [shape: f32[2,1,256], index: 14, kind: input, shape index: {}]   ;;  %s4555_s15 = inlined_call_operand.hbm [shape: bf16[2,256,128], index: 15, kind: input, shape index: {}]   ;;  %s4556_s16 = inlined_call_operand.vmem [shape: f32[2,1,128], index: 16, kind: input, shape index: {}]   ;;  %s4557_s17 = inlined_call_operand.vmem [shape: f32[2,1,128], index: 17, kind: input, shape index: {}]   ;;  %s4558_s18 = inlined_call_operand.vmem [shape: f32[2,1,128], index: 18, kind: input, shape index: {}]   ;;  %s4559_s19 = inlined_call_operand.hbm [shape: f32[2,16,128], index: 19, kind: output, shape index: {}]  }
   0x1   :  { %4594 = sst [smem:[#allocation52_spill]] %s4540_s0 }
   0x2   :  { %4595 = sst [smem:[#allocation53_spill]] %s4541_s1 }
   0x3   :  { %4596 = sst [smem:[#allocation54_spill]] %s4542_s2 }
   0x4   :  { %4597 = sst [smem:[#allocation55_spill]] %s4543_s3 }
   0x5   :  { %4598 = sst [smem:[#allocation56_spill]] %s4544_s4 }
   0x6   :  { %4599 = sst [smem:[#allocation57_spill]] %s4545_s5 }
   0x7   :  { %4600 = sst [smem:[#allocation58_spill]] %s4546_s6 }
   0x8   :  { %4601 = sst [smem:[#allocation59_spill]] %s4547_s7 }
   0x9   :  { %4602 = sst [smem:[#allocation60_spill]] %s4548_s8 }
   0xa   :  { %4603 = sst [smem:[#allocation61_spill]] %s4549_s9 }
   0xb   :  { %4604 = sst [smem:[#allocation62_spill]] %s4550_s10 }
   0xc   :  { %4605 = sst [smem:[#allocation63_spill]] %s4551_s11 }
   0xd   :  { %4606 = sst [smem:[#allocation64_spill]] %s4552_s12 }
   0xe   :  { %4607 = sst [smem:[#allocation65_spill]] %s4553_s13 }
   0xf   :  { %4608 = sst [smem:[#allocation66_spill]] %s4554_s14 }
  0x10   :  { %4609 = sst [smem:[#allocation67_spill]] %s4555_s15 }
  0x11   :  { %4610 = sst [smem:[#allocation68_spill]] %s4556_s16 }
  0x12   :  { %4611 = sst [smem:[#allocation69_spill]] %s4557_s17 }
  0x13   :  { %4612 = sst [smem:[#allocation70_spill]] %s4558_s18 }
  0x14   :  { %4613 = sst [smem:[#allocation71_spill]] %s4559_s19 }
  0x15   :  { %24 = vsyncpa [#allocation5], 0 }
  0x16   :  { %26 = vsyncpa [#allocation5 + $0x1], 0 }
  0x17   :  { %27 = vsyncpa [#allocation8], 0 }
  0x18   :  { %28 = vsyncpa [#allocation11], 0 }
  0x19   :  { %30 = vsyncpa [#allocation11 + $0x1], 0 }
  0x1a   :  { %31 = vsyncpa [#allocation14], 0 }
  0x1b   :  { %33 = vsyncpa [#allocation14 + $0x1], 0 }
  0x1c   :  { %34 = vsyncpa [#allocation17], 0 }
  0x1d   :  { %36 = vsyncpa [#allocation17 + $0x1], 0 }
  0x1e   :  { %37 = vsyncpa [#allocation20], 0 }
  0x1f   :  { %39 = vsyncpa [#allocation20 + $0x1], 0 }
  0x20   :  { %40 = vsyncpa [#allocation23], 0 }
  0x21   :  { %42 = vsyncpa [#allocation23 + $0x1], 0 }
  0x22   :  { %43 = vsyncpa [#allocation6], 0 }
  0x23   :  { %45 = vsyncpa [#allocation6 + $0x1], 0  ;;  %s3874_s0 = smov 0   ;;  %s3876_s30 = smov 0  }
  0x24   :  { %s3878_s20 = smov 0   ;;  %s3880_s21 = smov 0  }
  0x25   :  { %s3882_s1 = smov 0   ;;  %s3884_s22 = smov 0  }
  0x26   :  { %s3886_s2 = smov 0   ;;  %s3888_s23 = smov 0  }
  0x27   :  { %s3890_s24 = smov 0   ;;  %s3892_s25 = smov 0  }
  0x28   :  { %s3894_s3 = smov 0  }
  0x29 LB: > { %4614 = sst [smem:[#allocation33_spill]] %s3724_s30  ;;  %s3928_s26 = sadd.s32 4294967295, %s3760_s3   ;;  %s3760_s3 = sphi %s3894_s3, %s51_s3   ;;  %s3756_s25 = sphi %s3892_s25, %s4704_s25   ;;  %s3752_s24 = sphi %s3890_s24, %s4703_s24   ;;  %s3748_s23 = sphi %s3888_s23, %s4702_s23   ;;  %s3744_s2 = sphi %s3886_s2, %s4701_s2   ;;  %s3740_s22 = sphi %s3884_s22, %s4700_s22   ;;  %s3736_s1 = sphi %s3882_s1, %s4699_s1   ;;  %s3732_s21 = sphi %s3880_s21, %s4698_s21   ;;  %s3728_s20 = sphi %s3878_s20, %s4697_s20   ;;  %s3724_s30 = sphi %s3876_s30, %s4696_s30   ;;  %s3720_s0 = sphi %s3874_s0, %s4695_s0  }
  0x2a   : > { %4615 = sst [smem:[#allocation34_spill]] %s3728_s20  ;;  %p78_p0 = scmp.eq.s32.totalorder %s3760_s3, 0 }
  0x2b   : > { %4616 = sst [smem:[#allocation35_spill]] %s3732_s21  ;;  %p4574_p1 = scmp.eq.s32.totalorder %s3928_s26, 0 }
  0x2c   : > { %4617 = sst [smem:[#allocation36_spill]] %s3736_s1  ;;  %p145_p2 = scmp.ne.s32.totalorder %s3728_s20, %s3724_s30 }
  0x2d   : > { %4618 = sst [smem:[#allocation37_spill]] %s3740_s22  ;;  %p151_p3 = scmp.ne.s32.totalorder %s3724_s30, %s3720_s0 }
  0x2e   : > { %4619 = sst [smem:[#allocation38_spill]] %s3744_s2  ;;  %p565_p4 = scmp.eq.s32.totalorder %s3928_s26, 3 }
  0x2f   : > { %4620 = sst [smem:[#allocation39_spill]] %s3748_s23  ;;  %p3938_p5 = por %p145_p2, %p78_p0 }
  0x30   : > { %4621 = sst [smem:[#allocation40_spill]] %s3752_s24  ;;  %p2637_p6 = scmp.ge.s32.totalorder %s3760_s3, 1 }
  0x31   : > { %4622 = sst [smem:[#allocation41_spill]] %s3756_s25  ;;  %p3945_p7 = por %p151_p3, %p4574_p1 }
  0x32   : > { %4623 = sst [smem:[#allocation42_spill]] %s3760_s3  ;;  %p578_p8 = scmp.lt.s32.totalorder %s3760_s3, 5 }
  0x33   : > { %s4625_s28 = scalar_select %p3945_p7, 1, 0 }
  0x34   : > { %s4627_s0 = sld [smem:[#allocation53_spill]]  ;;  %p3953_p9 = pnand %p2637_p6, %p578_p8 }
  0x35   : > { %4626 = sst [smem:[#allocation43_spill]] %s4625_s28  ;;  %s3762_s17 = smov [#allocation7]  }
  0x36   : > { %s4628_s18 = scalar_select %p3953_p9, 1, 0 }
  0x37   : > { %p3047_p10 = pneg %p3953_p9  ;;  %s591_s16 = sshll.u32 %s3762_s17, 4  ;;  %s592_s16 = int_to_ptr.vmem [resolvable:$true] %s591_s16 }
  0x38   : > { %4629 = sst [smem:[#allocation44_spill]] %s4628_s18  ;;  %p3091_p12 = scmp.lt.s32.totalorder %s3760_s3, 4 }
  0x39   : > { %p3961_p11 = pnand %p3047_p10, %p4574_p1  ;;  %s4561_s19 = smov 128  }
  0x3a   : > { %s589_s23 = sshll.u32 %s4627_s0, 4  ;;  %s4563_s29 = smov 8   ;;  %s590_s23 = int_to_ptr.hbm [resolvable:$true] %s589_s23 }
  0x3b   : > { %3050 = dma.hbm_to_vmem [thread:$0]  (!%p3961_p11), %s590_s23, 256, %s592_s16, [#allocation8], %s4561_s19, %s4561_s19, %s4563_s29  }
  0x3c   : > { %p3975_p13 = pnand %p3091_p12, %p3938_p5  ;;  %s3980_s17 = sand.u32 1, %s3760_s3  }
  0x3d   : > { %s3983_s11 = sand.u32 1, %s3728_s20   ;;  %s3989_s6 = sshll.u32 %s3752_s24, 6 }
  0x3e   : > { %s3986_s10 = sshll.u32 %s3983_s11, 6  ;;  %s4632_s27 = sld [smem:[#allocation55_spill]] }
  0x3f   : > { %s645_s29 = scalar_lea.vmem [#allocation10], %s3986_s10  ;;  %s4570_s30 = scalar_lea.sflag [#allocation11], %s3980_s17 }
  0x40   : > { %s653_s2 = sshll.u32 %s645_s29, 4  ;;  %s4575_s18 = smov 64   ;;  %s654_s2 = int_to_ptr.vmem [resolvable:$true] %s653_s2 }
  0x41   : > { %s4577_s15 = smov 4   ;;  %s4633_s5 = sld [smem:[#allocation57_spill]] }
  0x42   : > { %s4573_s9 = scalar_lea.sflag [#allocation14], %s3980_s17  ;;  %s4634_s8 = sld [smem:[#allocation60_spill]] }
  0x43   : > { %s733_s23 = scalar_lea.vmem [#allocation16], %s3983_s11  ;;  %s4635_s12 = sld [smem:[#allocation64_spill]] }
  0x44   : > { %s650_s19 = scalar_lea.hbm %s4632_s27, %s3989_s6  ;;  %s689_s27 = scalar_lea.vmem [#allocation13], %s3986_s10 }
  0x45   : > { %s651_s28 = sshll.u32 %s650_s19, 4  ;;  %s697_s13 = sshll.u32 %s689_s27, 4  ;;  %s652_s28 = int_to_ptr.hbm [resolvable:$true] %s651_s28  ;;  %s698_s13 = int_to_ptr.vmem [resolvable:$true] %s697_s13 }
  0x46   : > { %3060 = dma.hbm_to_vmem [thread:$0]  (!%p3975_p13), %s652_s28, 1024, %s654_s2, %s4570_s30, %s4575_s18, %s4575_s18, %s4577_s15  }
  0x47   : > { %s694_s29 = scalar_lea.hbm %s4633_s5, %s3989_s6  ;;  %s4571_s27 = scalar_lea.sflag [#allocation17], %s3980_s17 }
  0x48   : > { %s695_s19 = sshll.u32 %s694_s29, 4  ;;  %s736_s16 = scalar_lea.hbm %s4634_s8, %s3752_s24  ;;  %s696_s19 = int_to_ptr.hbm [resolvable:$true] %s695_s19 }
  0x49   : > { %3066 = dma.hbm_to_vmem [thread:$0]  (!%p3975_p13), %s696_s19, 1024, %s698_s13, %s4573_s9, %s4575_s18, %s4575_s18, %s4577_s15  }
  0x4a   : > { %s740_s29 = sshll.u32 %s733_s23, 4  ;;  %s738_s30 = sshll.u32 %s736_s16, 4  ;;  %s741_s29 = int_to_ptr.vmem [resolvable:$true] %s740_s29  ;;  %s739_s30 = int_to_ptr.hbm [resolvable:$true] %s738_s30 }
  0x4b   : > { %3072 = dma.hbm_to_vmem [thread:$0]  (!%p3975_p13), %s739_s30, 16, %s741_s29, %s4571_s27  }
  0x4c   : > { %s787_s13 = scalar_lea.hbm %s4635_s12, %s3752_s24  ;;  %s784_s2 = scalar_lea.vmem [#allocation19], %s3983_s11 }
  0x4d   : > { %s789_s19 = sshll.u32 %s787_s13, 4  ;;  %s791_s28 = sshll.u32 %s784_s2, 4  ;;  %s790_s19 = int_to_ptr.hbm [resolvable:$true] %s789_s19  ;;  %s792_s28 = int_to_ptr.vmem [resolvable:$true] %s791_s28 }
  0x4e   : > { %s4572_s16 = scalar_lea.sflag [#allocation20], %s3980_s17  ;;  %s4636_s7 = sld [smem:[#allocation54_spill]] }
  0x4f   : > { %3078 = dma.hbm_to_vmem [thread:$0]  (!%p3975_p13), %s790_s19, 16, %s792_s28, %s4572_s16  }
  0x50   : > { %s3767_s29 = smov [#allocation9]   ;;  %s4637_s2 = smov 8  }
  0x51   : > { %s605_s13 = sshll.u32 %s3767_s29, 4  ;;  %s4638_s27 = smov 128   ;;  %s606_s13 = int_to_ptr.vmem [resolvable:$true] %s605_s13 }
  0x52   : > { %s2636_s19 = sadd.s32 4294967294, %s3760_s3   ;;  %s60_s28 = sadd.s32 1, %s3752_s24 }
  0x53   : > { %s63_s30 = sadd.s32 1, %s3756_s25  ;;  %p61_p2 = scmp.ge.s32.totalorder %s60_s28, 2 }
  0x54   : > { %s603_s23 = sshll.u32 %s4636_s7, 4  ;;  %s70_s5 = sadd.s32 1, %s3740_s22  ;;  %s604_s23 = int_to_ptr.hbm [resolvable:$true] %s603_s23 }
  0x55   : > { %3053 = dma.hbm_to_vmem [thread:$0]  (!%p3961_p11), %s604_s23, 256, %s606_s13, [#allocation8], %s4638_s27, %s4638_s27, %s4637_s2  }
  0x56   : > { %p77_p3 = scmp.ne.s32.totalorder %s3740_s22, %s3736_s1  ;;  %p83_p5 = scmp.ne.s32.totalorder %s3736_s1, %s3732_s21 }
  0x57   : > { %s4706_s28 = smov (%p61_p2, %s60_s28), 0  ;;  %s4708_s30 = smov (!%p61_p2, %s63_s30), %s3756_s25 }
  0x58   : > { %4639 = sst [smem:[#allocation45_spill]] %s4706_s28  ;;  %p4061_p6 = por %p78_p0, %p77_p3 }
  0x59   : > { %p4070_p8 = por %p4574_p1, %p83_p5  ;;  %p65_p10 = scmp.ge.s32.totalorder %s4708_s30, 2 }
  0x5a   : > { %s135_s23 = ssub.s32 %s3752_s24, %s4706_s28  ;;  %s138_s29 = sadd.s32 1, %s3728_s20 }
  0x5b   : > { %p136_p11 = scmp.eq.s32.totalorder %s135_s23, 0  ;;  %s4710_s30 = smov (%p65_p10, %s4708_s30), 0 }
  0x5c   : > { %4642 = sst [smem:[#allocation46_spill]] %s4710_s30  ;;  %s67_s16 = ssub.s32 %s3756_s25, %s4710_s30 }
  0x5d   : > { %s4080_s13 = scalar_select %p136_p11, %s3728_s20, %s138_s29  }
  0x5e   : > { %p4089_p0 = por %p565_p4, %p77_p3  ;;  %p68_p2 = scmp.eq.s32.totalorder %s67_s16, 0 }
  0x5f   : > { %4643 = sst [smem:[#allocation47_spill]] %s4080_s13  ;;  %p571_p1 = scmp.eq.s32.totalorder %s2636_s19, 3 }
  0x60   : > { %s4644_s9 = scalar_select %p4089_p0, 1, 0 }
  0x61   : > { %s619_s18 = sand.u32 1, %s3740_s22   ;;  %s2945_s23 = sshll.u32 %s3756_s25, 4 }
  0x62   : > { %4645 = sst [smem:[#allocation48_spill]] %s4644_s9  ;;  %p4101_p10 = por %p571_p1, %p83_p5 }
  0x63   : > { %s4096_s15 = scalar_select %p68_p2, %s3740_s22, %s70_s5  }
  0x64   : > { %s4647_s29 = scalar_select %p4101_p10, 1, 0 }
  0x65   : > { %4646 = sst [smem:[#allocation49_spill]] %s4096_s15  ;;  %s2641_s8 = sshll.u32 %s619_s18, 4 }
  0x66   : > { %4648 = sst [smem:[#allocation50_spill]] %s4647_s29  ;;  %s623_s19 = scalar_lea.vmem [#allocation4], %s2641_s8 }
  0x67   : > { %s4649_s28 = sld [smem:[#allocation52_spill]]  ;;  %s631_s25 = sshll.u32 %s623_s19, 4  ;;  %s632_s25 = int_to_ptr.vmem [resolvable:$true] %s631_s25 }
  0x68   : > { %p3055_p1 = pnand %p3091_p12, %p4061_p6  ;;  %s4650_s4 = sld [smem:[#allocation56_spill]] }
  0x69   : > { %s667_s8 = scalar_lea.vmem [#allocation12], %s3986_s10  ;;  %s4651_s14 = smov 4  }
  0x6a   : > { %s675_s30 = sshll.u32 %s667_s8, 4  ;;  %s4653_s15 = scalar_lea.sflag [#allocation11], %s3980_s17  ;;  %s676_s30 = int_to_ptr.vmem [resolvable:$true] %s675_s30 }
  0x6b   : > { %s716_s5 = scalar_lea.vmem [#allocation15], %s3983_s11  ;;  %s4656_s20 = sld [smem:[#allocation61_spill]] }
  0x6c   : > { %s4660_s8 = sld [smem:[#allocation67_spill]] }
  0x6d   : > { %s628_s13 = scalar_lea.hbm %s4649_s28, %s2945_s23  ;;  %s620_s28 = scalar_lea.sflag [#allocation5], %s619_s18 }
  0x6e   : > { %s629_s16 = sshll.u32 %s628_s13, 4  ;;  %s672_s22 = scalar_lea.hbm %s4650_s4, %s3989_s6  ;;  %s630_s16 = int_to_ptr.hbm [resolvable:$true] %s629_s16 }
  0x6f   : > { %s673_s12 = sshll.u32 %s672_s22, 4  ;;  %s4652_s13 = smov 64   ;;  %s674_s12 = int_to_ptr.hbm [resolvable:$true] %s673_s12 }
  0x70   : > { %3057 = dma.hbm_to_vmem [thread:$0]  (!%p3055_p1), %s630_s16, 256, %s632_s25, %s620_s28, %s4638_s27, %s4638_s27, %s4637_s2  }
  0x71   : > { %3063 = dma.hbm_to_vmem [thread:$0]  (!%p3975_p13), %s674_s12, 1024, %s676_s30, %s4653_s15, %s4652_s13, %s4652_s13, %s4651_s14  }
  0x72   : > { %s4654_s18 = sld [smem:[#allocation59_spill]]  ;;  %s723_s25 = sshll.u32 %s716_s5, 4  ;;  %s724_s25 = int_to_ptr.vmem [resolvable:$true] %s723_s25 }
  0x73   : > { %s4655_s28 = scalar_lea.sflag [#allocation14], %s3980_s17  ;;  %s756_s29 = scalar_lea.hbm %s4656_s20, %s3989_s6 }
  0x74   : > { %s751_s12 = scalar_lea.vmem [#allocation18], %s3986_s10  ;;  %s757_s15 = sshll.u32 %s756_s29, 4  ;;  %s758_s15 = int_to_ptr.hbm [resolvable:$true] %s757_s15 }
  0x75   : > { %s759_s30 = sshll.u32 %s751_s12, 4  ;;  %s2656_s22 = sshll.u32 %s3983_s11, 7  ;;  %s760_s30 = int_to_ptr.vmem [resolvable:$true] %s759_s30 }
  0x76   : > { %s4657_s23 = scalar_lea.sflag [#allocation17], %s3980_s17  ;;  %s4658_s5 = sld [smem:[#allocation65_spill]] }
  0x77   : > { %3075 = dma.hbm_to_vmem [thread:$0]  (!%p3975_p13), %s758_s15, 1024, %s760_s30, %s4657_s23, %s4652_s13, %s4652_s13, %s4651_s14  }
  0x78   : > { %s719_s19 = scalar_lea.hbm %s4654_s18, %s3752_s24  ;;  %s2950_s18 = sshll.u32 %s3752_s24, 7 }
  0x79   : > { %s721_s16 = sshll.u32 %s719_s19, 4  ;;  %s802_s6 = scalar_lea.vmem [#allocation21], %s2656_s22  ;;  %s722_s16 = int_to_ptr.hbm [resolvable:$true] %s721_s16 }
  0x7a   : > { %3069 = dma.hbm_to_vmem [thread:$0]  (!%p3975_p13), %s722_s16, 16, %s724_s25, %s4655_s28  }
  0x7b   : > { %s810_s10 = sshll.u32 %s802_s6, 4  ;;  %s4659_s29 = scalar_lea.sflag [#allocation20], %s3980_s17  ;;  %s811_s10 = int_to_ptr.vmem [resolvable:$true] %s810_s10 }
  0x7c   : > { %s807_s25 = scalar_lea.hbm %s4658_s5, %s2950_s18  ;;  %s836_s12 = scalar_lea.hbm %s4660_s8, %s2950_s18 }
  0x7d   : > { %s808_s20 = sshll.u32 %s807_s25, 4  ;;  %s837_s30 = sshll.u32 %s836_s12, 4  ;;  %s809_s20 = int_to_ptr.hbm [resolvable:$true] %s808_s20  ;;  %s838_s30 = int_to_ptr.hbm [resolvable:$true] %s837_s30 }
  0x7e   : > { %3081 = dma.hbm_to_vmem [thread:$0]  (!%p3975_p13), %s809_s20, 2048, %s811_s10, %s4659_s29, %s4638_s27, %s4638_s27, %s4637_s2  }
  0x7f   : > { %s831_s15 = scalar_lea.vmem [#allocation22], %s2656_s22  ;;  %s828_s19 = scalar_lea.sflag [#allocation23], %s3983_s11 }
  0x80   : > { %s839_s23 = sshll.u32 %s831_s15, 4  ;;  %869 = sbr.rel (%p3953_p9) target bundleno = 2224 (0x8b0), region = 96  ;;  %s840_s23 = int_to_ptr.vmem [resolvable:$true] %s839_s23 }
  0x81   : > { %3084 = dma.hbm_to_vmem [thread:$0]  (!%p3975_p13), %s838_s30, 2048, %s840_s23, %s828_s19, %s4652_s13, %s4652_s13, %s4651_s14  }
  0x85   : > { %s4172_s17 = sand.u32 1, %s3736_s1  }
  0x86   : > { %s4585_s27 = sshll.u32 %s4172_s17, 4  ;;  %s872_s2 = scalar_lea.sflag [#allocation5], %s4172_s17 }
  0x87   : > { %s4178_s22 = scalar_lea.vmem [#allocation4], %s4585_s27 }
  0x88   : > { %3687 = dma.done.wait (%p4070_p8), %s872_s2, 256  }
  0x89   : > { %3689 = vsyncadd (%p4070_p8), %s872_s2, 4294967040  ;;  %p4662_p4 = scmp.eq.s32.totalorder %s3928_s26, 0 }
  0x8b   : > { %3691 = dma.done.wait (%p4662_p4), [#allocation8], 512   ;;  %p4663_p9 = pmov %p4662_p4 }
  0x8c   : > { %s4664_s11 = sld [smem:[#allocation33_spill]]  ;;  %s891_s14 = sand.u32 1, %s3928_s26  }
  0x8d   : > { %3693 = vsyncadd (%p4663_p9), [#allocation8], 4294966784  ;;  %s892_s5 = scalar_lea.sflag [#allocation11], %s891_s14 }
  0x92   : > { %s4190_s13 = sand.u32 1, %s4664_s11  }
  0x93   : > { %s2666_s18 = sshll.u32 %s4190_s13, 6 }
  0x94   : > { %s4193_s25 = scalar_lea.vmem [#allocation10], %s2666_s18 }
  0x95   : > { %3695 = dma.done.wait (%p3945_p7), %s892_s5, 2048  }
  0x96   : > { %3697 = vsyncadd (%p3945_p7), %s892_s5, 4294965248  ;;  %s4199_s7 = scalar_lea.vmem [#allocation12], %s2666_s18  ;;  %s912_s6 = scalar_lea.sflag [#allocation14], %s891_s14 }
  0x97   : > { %s4201_s10 = scalar_lea.vmem [#allocation13], %s2666_s18 }
  0x98   : > { %3699 = dma.done.wait (%p3945_p7), %s912_s6, 1040  }
  0x99   : > { %3701 = vsyncadd (%p3945_p7), %s912_s6, 4294966256  ;;  %s931_s20 = scalar_lea.sflag [#allocation17], %s891_s14 }
  0x9a   : > { %3703 = dma.done.wait (%p3945_p7), %s931_s20, 1040  }
  0x9b   : > { %3705 = vsyncadd (%p3945_p7), %s931_s20, 4294966256  ;;  %s4213_s16 = scalar_lea.vmem [#allocation18], %s2666_s18  ;;  %s950_s28 = scalar_lea.sflag [#allocation20], %s891_s14 }
  0x9c   : > { %3707 = dma.done.wait (%p3945_p7), %s950_s28, 2064  }
  0x9d   : > { %3709 = vsyncadd (%p3945_p7), %s950_s28, 4294965232  ;;  %s2670_s12 = sshll.u32 %s4190_s13, 7  ;;  %s969_s15 = scalar_lea.sflag [#allocation23], %s4190_s13 }
  0x9e   : > { %s4221_s30 = scalar_lea.vmem [#allocation21], %s2670_s12  ;;  %s4224_s23 = scalar_lea.vmem [#allocation22], %s2670_s12 }
  0x9f   : > { %4666 = sst [smem:[#allocation51_spill]] %s4224_s23 }
  0xa0   : > { %3711 = dma.done.wait (%p3945_p7), %s969_s15, 2048  }
  0xa1   : > { %3713 = vsyncadd (%p3945_p7), %s969_s15, 4294965248  ;;  %s4667_s19 = sld [smem:[#allocation38_spill]]  ;;  %s4675_s28 = sshll.u32 %s4172_s17, 4 }
  0xa2   : > { %s4670_s15 = sld [smem:[#allocation63_spill]]  ;;  %s4266_s12 = scalar_lea.vmem [#allocation24], %s4675_s28 }
  0xa3   : > { %s4671_s24 = sld [smem:[#allocation66_spill]] }
  0xa4   : > { %s4672_s21 = sld [smem:[#allocation68_spill]] }
  0xa5   : > { %s4673_s18 = sld [smem:[#allocation69_spill]] }
  0xa6   : > { %s4674_s6 = sld [smem:[#allocation70_spill]] }
  0xa7   : > { %p1092_p12 = scmp.lt.s32.totalorder %s4667_s19, 1  ;;  %p2674_p7 = scmp.ne.s32.totalorder %s4667_s19, 0 }
  0xa9   : > { %s4232_s4 = scalar_select %p1092_p12, %s4667_s19, 1 }
  0xaa   : > { %1118 = sbr.rel (%p2674_p7) target bundleno = 178 (0xb2), region = 148 }
  0xab   : > { %s1100_s8 = scalar_lea.vmem %s4670_s15, %s4232_s4  ;;  %s2673_s29 = sshll.u32 %s4232_s4, 1 }
  0xac   : > { %s4250_s2 = scalar_lea.vmem %s4671_s24, %s2673_s29  ;;  %s1107_s3 = scalar_lea.vmem %s4672_s21, %s4232_s4 }
  0xad   : > { %s1110_s23 = scalar_lea.vmem %s4673_s18, %s4232_s4  ;;  %s1113_s20 = scalar_lea.vmem %s4674_s6, %s4232_s4 }
  0xaf   : > { %v1119_v0 = vld [vmem:[%s4178_s22] sm:$0xff]  ;;  %v1120_v1 = vld [vmem:[%s4178_s22 + $0x8] sm:$0xff] }
  0xb0   : > { %1121 = vst [vmem:[#allocation2] sm:$0xff] %v1119_v0 }
  0xb1   : > { %1122 = vst [vmem:[#allocation2 + $0x8] sm:$0xff] %v1120_v1 }
  0xb2 PF: > { %v2959_v2 = vld [vmem:[%s4193_s25 + $0x38] sm:$0xff]  ;;  %v2958_v4 = vld [vmem:[%s4193_s25 + $0x30] sm:$0xff]  ;;  %v2957_v6 = vld [vmem:[%s4193_s25 + $0x28] sm:$0xff]  ;;  %s4676_s9 = scalar_lea.vmem [#allocation15], %s4190_s13  ;;  %vm1381_vm0 = vcmask 261120   ;;  %s4677_s24 = sld [smem:[#allocation58_spill]] }
  0xb3   : > { %v2967_v3 = vld [vmem:[%s4199_s7 + $0x38] sm:$0xff]  ;;  %1200 = vmatpush.bf16.msra.mxu0 %v2959_v2  ;;  %v2966_v5 = vld [vmem:[%s4199_s7 + $0x30] sm:$0xff]  ;;  %v2965_v7 = vld [vmem:[%s4199_s7 + $0x28] sm:$0xff]  ;;  %s3768_s22 = smov 64   ;;  %vm1406_vm1 = vcmask 130048   ;;  %vm1531_vm2 = vcmask 523520  }
  0xb4   : > { %1282 = vmatpush.bf16.msra.mxu1 %v2967_v3  ;;  %v2975_v8 = vld [vmem:[%s4201_s10 + $0x38] sm:$0xff]  ;;  %v2974_v9 = vld [vmem:[%s4201_s10 + $0x30] sm:$0xff]  ;;  %v2956_v10 = vld [vmem:[%s4193_s25 + $0x20] sm:$0xff]  ;;  %vm1613_vm3 = vcmask 785920   ;;  %vm1695_vm4 = vcmask 1048320   ;;  %s4682_s18 = sld [smem:[#allocation51_spill]] }
  0xb5   : > { %1364 = vmatpush.bf16.msra.mxu2 %v2975_v8  ;;  %v2964_v11 = vld [vmem:[%s4199_s7 + $0x20] sm:$0xff]  ;;  %v2973_v12 = vld [vmem:[%s4201_s10 + $0x28] sm:$0xff]  ;;  %v2955_v13 = vld [vmem:[%s4193_s25 + $0x18] sm:$0xff] }
  0xb6   : > { %v2963_v14 = vld [vmem:[%s4199_s7 + $0x18] sm:$0xff]  ;;  %v2972_v15 = vld [vmem:[%s4201_s10 + $0x20] sm:$0xff]  ;;  %v2954_v16 = vld [vmem:[%s4193_s25 + $0x10] sm:$0xff] }
  0xb7   : > { %1201 = vmatpush.bf16.msra.mxu0 %v2958_v4  ;;  %v2962_v17 = vld [vmem:[%s4199_s7 + $0x10] sm:$0xff]  ;;  %v2971_v18 = vld [vmem:[%s4201_s10 + $0x18] sm:$0xff]  ;;  %v2953_v19 = vld [vmem:[%s4193_s25 + $0x8] sm:$0xff] }
  0xb8   : > { %1283 = vmatpush.bf16.msra.mxu1 %v2966_v5  ;;  %v2961_v20 = vld [vmem:[%s4199_s7 + $0x8] sm:$0xff]  ;;  %v4290_v21 = vld [vmem:[#allocation2] sm:$0xff]  ;;  %v2970_v25 = vld [vmem:[%s4201_s10 + $0x10] sm:$0xff]  ;;  %s4678_s27 = scalar_lea.vmem %s4677_s24, %s4232_s4 }
  0xb9   : > { %1365 = vmatpush.bf16.msra.mxu2 %v2974_v9  ;;  %v4292_v22 = vld [vmem:[#allocation2 + $0x8] sm:$0xff]  ;;  %v1125_v23 = vld [vmem:[#allocation7] sm:$0xff]  ;;  %v1127_v57 = vld [vmem:[#allocation9] sm:$0xff] }
  0xba   : > { %v1126_v24 = vld [vmem:[#allocation7 + $0x8] sm:$0xff]  ;;  %v1129_v26 = vadd.f32 %v1125_v23, %v4290_v21  ;;  %v2952_v28 = vld [vmem:[%s4193_s25] sm:$0xff]  ;;  %s3769_s25 = smov 96   ;;  %v1128_v62 = vld [vmem:[#allocation9 + $0x8] sm:$0xff] }
  0xbb   : > { %1202 = vmatpush.bf16.msra.mxu0 %v2957_v6  ;;  %v1130_v27 = vadd.f32 %v1126_v24, %v4292_v22  ;;  %v2960_v29 = vld [vmem:[%s4199_s7] sm:$0xff]  ;;  %v2969_v30 = vld [vmem:[%s4201_s10 + $0x8] sm:$0xff]  ;;  %s3770_s7 = smov 32  }
  0xbc   : > { %1284 = vmatpush.bf16.msra.mxu1 %v2965_v7  ;;  %v2968_v32 = vld [vmem:[%s4201_s10] sm:$0xff]  ;;  %s4679_s10 = scalar_lea.vmem [#allocation16], %s4190_s13 }
  0xbd   : > { %1366 = vmatpush.bf16.msra.mxu2 %v2973_v12  ;;  %v1131_v31 = vpack.c.bf16 %v1130_v27, %v1129_v26  ;;  %v3196_v35 = vld [vmem:[%s4676_s9] ss:$0 sm:$0xff] }
  0xbe   : > { %v3195_v39 = vld [vmem:[%s4678_s27] ss:$0 sm:$0xff] }
  0xbf   : > { %1203 = vmatpush.bf16.msra.mxu0 %v2956_v10  ;;  %v3197_v47 = vld [vmem:[%s4679_s10] ss:$0 sm:$0xff] }
  0xc0   : > { %1285 = vmatpush.bf16.msra.mxu1 %v2964_v11 }
  0xc1   : > { %1367 = vmatpush.bf16.msra.mxu2 %v2972_v15 }
  0xc3   : > { %1204 = vmatpush.bf16.msra.mxu0 %v2955_v13 }
  0xc4   : > { %1286 = vmatpush.bf16.msra.mxu1 %v2963_v14 }
  0xc5   : > { %1368 = vmatpush.bf16.msra.mxu2 %v2971_v18 }
  0xc7   : > { %1205 = vmatpush.bf16.msra.mxu0 %v2954_v16 }
  0xc8   : > { %1287 = vmatpush.bf16.msra.mxu1 %v2962_v17 }
  0xc9   : > { %1369 = vmatpush.bf16.msra.mxu2 %v2970_v25 }
  0xcb   : > { %1206 = vmatpush.bf16.msra.mxu0 %v2953_v19 }
  0xcc   : > { %1288 = vmatpush.bf16.msra.mxu1 %v2961_v20 }
  0xcd   : > { %1370 = vmatpush.bf16.msra.mxu2 %v2969_v30 }
  0xcf   : > { %1207 = vmatpush.bf16.msra.mxu0 %v2952_v28 }
  0xd0   : > { %1289 = vmatpush.bf16.msra.mxu1 %v2960_v29 }
  0xd1   : > { %1371 = vmatpush.bf16.msra.mxu2 %v2968_v32 }
  0xd2   : > { %1208 = vmatmul.bf16.vlgmr.msra.gmra.mxu0 %v1131_v31 }
  0xd3   : > { %1290 = vmatmul.bf16.vlgmr.msra.gmra.mxu1 %v1131_v31 }
  0xd4   : > { %1372 = vmatmul.bf16.vlgmr.msra.gmra.mxu2 %v1131_v31 }
 0x14f   : > { %v1209_v34 = vpop.f32.mrf.mxu0 }
 0x150   : > { %v1291_v33 = vpop.f32.mrf.mxu1  ;;  %v1210_v43 = vadd.f32 %v3195_v39, %v1209_v34 }
 0x151   : > { %v1292_v37 = vadd.f32 %v3196_v35, %v1291_v33 }
 0x157   : > { %v1211_v41 = vpop.f32.mrf.mxu0  ;;  %v1373_v46 = vpop.f32.mrf.mxu2 }
 0x158   : > { %v1293_v36 = vpop.f32.mrf.mxu1  ;;  %v1212_v44 = vadd.f32 %v3195_v39, %v1211_v41  ;;  %v1374_v48 = vadd.f32 %v3197_v47, %v1373_v46 }
 0x159   : > { %v1294_v38 = vadd.f32 %v3196_v35, %v1293_v36 }
 0x15a   : > { %v1378_v45 = vpack.c.bf16 %v1212_v44, %v1210_v43 }
 0x15b   : > { %v1379_v40 = vpack.c.bf16 %v1294_v38, %v1292_v37 }
 0x15d   : > { %1536 = vrot.lane.b32.xlu2 %v1379_v40, %s3768_s22  ;;  %1453 = vrot.lane.b32.xlu1 %v1379_v40, %s3769_s25  ;;  %v1386_v42 = vsel %vm1381_vm0, %v1379_v40, 0 }
 0x15e   : > { %1395 = vmatpush.bf16.xpose.msra.mxu3 %v1386_v42 }
 0x15f   : > { %v1375_v49 = vpop.f32.mrf.mxu2 }
 0x160   : > { %v1376_v50 = vadd.f32 %v3197_v47, %v1375_v49 }
 0x162   : > { %v4317_v51 = vpack.c.bf16 %v1376_v50, %v1374_v48 }
 0x165   : > { %1618 = vrot.lane.b32.xlu2 %v1379_v40, %s3770_s7  ;;  %1450 = vrot.lane.b32.xlu1 %v1378_v45, %s3769_s25 }
 0x166   : > { %2771 = vmatmul.msk.bf16.vlgmr.msra.gmra.mxu3 %vm1381_vm0, %v1378_v45 }
 0x167   : > { %1436 = vmatpush.bf16.msrb.mxu3 %v4317_v51 }
 0x16d   : > { %1616 = vrot.lane.b32.xlu1 %v1378_v45, %s3770_s7 }
 0x1b7   : > { %v1537_v52 = vpop.permute.xlu2 %1536 }
 0x1b8   : > { %v1542_v53 = vsel %vm1381_vm0, %v1537_v52, 0 }
 0x1b9   : > { %1551 = vmatpush.bf16.xpose.msrb.mxu2 %v1542_v53 }
 0x1bf   : > { %v1619_v10 = vpop.permute.xlu2 %1618 }
 0x1c0   : > { %v1624_v12 = vsel %vm1381_vm0, %v1619_v10, 0 }
 0x1cf   : > { %v1454_v54 = vpop.permute.xlu1 %1453 }
 0x1d0   : > { %v1459_v55 = vsel %vm1381_vm0, %v1454_v54, 0 }
 0x1d1   : > { %1468 = vmatpush.bf16.xpose.msra.mxu3 %v1459_v55 }
 0x1d7   : > { %v1451_v14 = vpop.permute.xlu1 %1450 }
 0x1df   : > { %v1617_v15 = vpop.permute.xlu1 %1616 }
 0x1e9   : > { %v1397_v56 = vpop.f32.mrf.mxu3 }
 0x1ea   : > { %v1402_v58 = vmul.f32 0.17677669, %v1397_v56 }
 0x1ec   : > { %v1404_v59 = vadd.f32 %v1402_v58, %v1127_v57 }
 0x1ee   : > { %v1407_v60 = vsel %vm1406_vm1, %v1404_v59, -inf }
 0x1ef   : > { %1408 = vmax.xlane.f32.xlu0 %v1407_v60 }
 0x1f1   : > { %v1399_v61 = vpop.f32.mrf.mxu3 }
 0x1f2   : > { %v1403_v63 = vmul.f32 0.17677669, %v1399_v61 }
 0x1f4   : > { %v1405_v0 = vadd.f32 %v1403_v63, %v1128_v62 }
 0x1f6   : > { %v1410_v1 = vsel %vm1406_vm1, %v1405_v0, -inf }
 0x1f7   : > { %1411 = vmax.xlane.f32.xlu0 %v1410_v1 }
 0x20b   : > { %1534 = vrot.lane.b32.xlu0 %v1378_v45, %s3768_s22 }
 0x262   : > { %v1409_v2 = vpop.xlane.xlu0 %1408 }
 0x263   : > { %v1413_v3 = vsub.f32 %v1404_v59, %v1409_v2 }
 0x265   : > { %v1415_v4 = vmul.f32 1.442695, %v1413_v3 }
 0x267   : > { %3204 = vpow2.f32 %v1415_v4 }
 0x26a   : > { %v1412_v5 = vpop.xlane.xlu0 %1411 }
 0x26b   : > { %v1414_v6 = vsub.f32 %v1405_v0, %v1412_v5 }
 0x26d   : > { %v1417_v7 = vmul.f32 1.442695, %v1414_v6  ;;  %v4325_v8 = vpop.eup %3204 }
 0x26e   : > { %v1419_v3 = vsel %vm1406_vm1, %v4325_v8, 0.0 }
 0x26f   : > { %3206 = vpow2.f32 %v1417_v7 }
 0x275   : > { %v3207_v9 = vpop.eup %3206 }
 0x276   : > { %v1425_v11 = vpack.c.bf16 %v3207_v9, %v4325_v8  ;;  %v1422_v44 = vsel %vm1406_vm1, %v3207_v9, 0.0 }
 0x278   : > { %2772 = vmatmul.msk.bf16.vlgmr.msrb.gmra.mxu3 %vm1406_vm1, %v1425_v11 }
 0x279   : > { %1633 = vmatpush.bf16.xpose.msrb.mxu3 %v1624_v12 }
 0x27d   : > { %v1535_v13 = vpop.permute.xlu0 %1534 }
 0x27e   : > { %2775 = vmatmul.msk.bf16.vlgmr.msrb.gmra.mxu2 %vm1381_vm0, %v1535_v13 }
 0x288   : > { %2773 = vmatmul.msk.bf16.vlgmr.msra.gmra.mxu3 %vm1381_vm0, %v1451_v14 }
 0x298   : > { %2777 = vmatmul.msk.bf16.vlgmr.msrb.gmra.mxu3 %vm1381_vm0, %v1617_v15 }
 0x2fb   : > { %v4333_v16 = vpop.f32.mrf.mxu3 }
 0x301   : > { %v1553_v17 = vpop.f32.mrf.mxu2 }
 0x302   : > { %v1558_v18 = vmul.f32 0.17677669, %v1553_v17 }
 0x303   : > { %v4335_v19 = vpop.f32.mrf.mxu3 }
 0x304   : > { %v1560_v20 = vadd.f32 %v1558_v18, %v1127_v57 }
 0x306   : > { %v1562_v23 = vsel %vm1406_vm1, %v1560_v20, -inf }
 0x307   : > { %1563 = vmax.xlane.f32.xlu0 %v1562_v23 }
 0x309   : > { %v1555_v24 = vpop.f32.mrf.mxu2 }
 0x30a   : > { %v1559_v25 = vmul.f32 0.17677669, %v1555_v24 }
 0x30b   : > { %v1470_v26 = vpop.f32.mrf.mxu3 }
 0x30c   : > { %v1561_v27 = vadd.f32 %v1559_v25, %v1128_v62  ;;  %v1475_v28 = vmul.f32 0.17677669, %v1470_v26 }
 0x30e   : > { %v1565_v29 = vsel %vm1406_vm1, %v1561_v27, -inf  ;;  %v1477_v30 = vadd.f32 %v1475_v28, %v1127_v57 }
 0x30f   : > { %1566 = vmax.xlane.f32.xlu2 %v1565_v29 }
 0x310   : > { %v1479_v33 = vsel %vm1406_vm1, %v1477_v30, -inf }
 0x313   : > { %v1472_v31 = vpop.f32.mrf.mxu3 }
 0x314   : > { %v1476_v32 = vmul.f32 0.17677669, %v1472_v31 }
 0x316   : > { %v1478_v34 = vadd.f32 %v1476_v32, %v1128_v62 }
 0x317   : > { %1480 = vmax.xlane.f32.xlu2 %v1479_v33 }
 0x318   : > { %v1482_v35 = vsel %vm1406_vm1, %v1478_v34, -inf }
 0x319   : > { %1483 = vmax.xlane.f32.xlu1 %v1482_v35 }
 0x31b   : > { %v1635_v36 = vpop.f32.mrf.mxu3  ;;  %1581 = vrot.lane.b32.xlu0 %v4317_v51, %s3768_s22 }
 0x31c   : > { %v1640_v37 = vmul.f32 0.17677669, %v1635_v36 }
 0x31e   : > { %v1642_v38 = vadd.f32 %v1640_v37, %v1127_v57 }
 0x320   : > { %v1644_v39 = vsel %vm1406_vm1, %v1642_v38, -inf }
 0x321   : > { %1645 = vmax.xlane.f32.xlu1 %v1644_v39 }
 0x323   : > { %v1637_v40 = vpop.f32.mrf.mxu3 }
 0x324   : > { %v1641_v41 = vmul.f32 0.17677669, %v1637_v40 }
 0x326   : > { %v1643_v42 = vadd.f32 %v1641_v41, %v1128_v62 }
 0x328   : > { %v1647_v43 = vsel %vm1406_vm1, %v1643_v42, -inf }
 0x329   : > { %1648 = vmax.xlane.f32.xlu1 %v1647_v43 }
 0x32f   : > { %1499 = vrot.lane.b32.xlu2 %v4317_v51, %s3769_s25 }
 0x342   : > { %1663 = vrot.lane.b32.xlu1 %v4317_v51, %s3770_s7 }
 0x345   : > { %1423 = vadd.xlane.f32.xlu0 %v1422_v44 }
 0x37a   : > { %v1564_v45 = vpop.xlane.xlu0 %1563 }
 0x37b   : > { %v1568_v46 = vsub.f32 %v1560_v20, %v1564_v45 }
 0x37d   : > { %v1570_v47 = vmul.f32 1.442695, %v1568_v46 }
 0x37f   : > { %3208 = vpow2.f32 %v1570_v47 }
 0x382   : > { %v1567_v48 = vpop.xlane.xlu2 %1566 }
 0x383   : > { %v1569_v49 = vsub.f32 %v1561_v27, %v1567_v48 }
 0x385   : > { %v3209_v50 = vpop.eup %3208  ;;  %v1572_v52 = vmul.f32 1.442695, %v1569_v49 }
 0x386   : > { %v1574_v53 = vsel %vm1406_vm1, %v3209_v50, 0.0 }
 0x387   : > { %3210 = vpow2.f32 %v1572_v52  ;;  %1575 = vadd.xlane.f32.xlu1 %v1574_v53  ;;  %v2982_v52 = vld [vmem:[%s4213_s16 + $0x30] sm:$0xff]  ;;  %v2981_v53 = vld [vmem:[%s4213_s16 + $0x28] sm:$0xff] }
 0x38a   : > { %v1481_v54 = vpop.xlane.xlu2 %1480 }
 0x38b   : > { %v1485_v55 = vsub.f32 %v1477_v30, %v1481_v54 }
 0x38c   : > { %v1484_v56 = vpop.xlane.xlu1 %1483 }
 0x38d   : > { %v3211_v57 = vpop.eup %3210  ;;  %v1487_v51 = vmul.f32 1.442695, %v1485_v55  ;;  %v1486_v58 = vsub.f32 %v1478_v34, %v1484_v56  ;;  %v1582_v59 = vpop.permute.xlu0 %1581  ;;  %v2980_v55 = vld [vmem:[%s4213_s16 + $0x20] sm:$0xff]  ;;  %v2979_v56 = vld [vmem:[%s4213_s16 + $0x18] sm:$0xff] }
 0x38e   : > { %v1580_v60 = vpack.c.bf16 %v3211_v57, %v3209_v50  ;;  %1594 = vmatpush.bf16.msra.mxu2 %v1582_v59  ;;  %v1577_v61 = vsel %vm1406_vm1, %v3211_v57, 0.0  ;;  %v2983_v50 = vld [vmem:[%s4213_s16 + $0x38] sm:$0xff]  ;;  %v2978_v57 = vld [vmem:[%s4213_s16 + $0x10] sm:$0xff] }
 0x38f   : > { %v1489_v62 = vmul.f32 1.442695, %v1486_v58  ;;  %1578 = vadd.xlane.f32.xlu2 %v1577_v61  ;;  %3212 = vpow2.f32 %v1487_v51  ;;  %1769 = vmatpush.bf16.msrb.mxu1 %v2983_v50  ;;  %v2977_v51 = vld [vmem:[%s4213_s16 + $0x8] sm:$0xff]  ;;  %v2976_v58 = vld [vmem:[%s4213_s16] sm:$0xff]  ;;  %s4680_s16 = sld [smem:[#allocation62_spill]] }
 0x391   : > { %3214 = vpow2.f32 %v1489_v62  ;;  %2776 = vmatmul.msk.bf16.vlgmr.msra.gmra.mxu2 %vm1406_vm1, %v1580_v60 }
 0x392   : > { %v1500_v63 = vpop.permute.xlu2 %1499 }
 0x393   : > { %1512 = vmatpush.bf16.msrb.mxu0 %v1500_v63  ;;  %1770 = vmatpush.bf16.msrb.mxu1 %v2982_v52 }
 0x394   : > { %v1646_v0 = vpop.xlane.xlu1 %1645 }
 0x395   : > { %v1650_v1 = vsub.f32 %v1642_v38, %v1646_v0  ;;  %v3213_v2 = vpop.eup %3212  ;;  %s4681_s19 = scalar_lea.vmem %s4680_s16, %s4232_s4 }
 0x396   : > { %v1491_v11 = vsel %vm1406_vm1, %v3213_v2, 0.0 }
 0x397   : > { %v3215_v4 = vpop.eup %3214  ;;  %1420 = vadd.xlane.f32.xlu2 %v1419_v3  ;;  %v1652_v7 = vmul.f32 1.442695, %v1650_v1  ;;  %1771 = vmatpush.bf16.msrb.mxu1 %v2981_v53  ;;  %v3198_v3 = vld [vmem:[%s4681_s19] ss:$0 sm:$0xff]  ;;  %v2837_v53 = vld [vmem:[%s4221_s30 + $0x30] sm:$0xf] }
 0x398   : > { %v1494_v5 = vsel %vm1406_vm1, %v3215_v4, 0.0  ;;  %v1497_v6 = vpack.c.bf16 %v3215_v4, %v3213_v2 }
 0x399   : > { %1495 = vadd.xlane.f32.xlu0 %v1494_v5  ;;  %3216 = vpow2.f32 %v1652_v7 }
 0x39a   : > { %2774 = vmatmul.msk.bf16.vlgmr.msrb.gmra.mxu0 %vm1406_vm1, %v1497_v6 }
 0x39b   : > { %1772 = vmatpush.bf16.msrb.mxu1 %v2980_v55  ;;  %v2990_v55 = vld [vmem:[%s4221_s30 + $0x34] sm:$0xf] }
 0x39c   : > { %v1649_v9 = vpop.xlane.xlu1 %1648 }
 0x39d   : > { %v1651_v10 = vsub.f32 %v1643_v42, %v1649_v9 }
 0x39f   : > { %v1654_v12 = vmul.f32 1.442695, %v1651_v10  ;;  %1492 = vadd.xlane.f32.xlu2 %v1491_v11  ;;  %v3217_v13 = vpop.eup %3216  ;;  %1773 = vmatpush.bf16.msrb.mxu1 %v2979_v56  ;;  %v3771_v11 = vmov 128.0   ;;  %v2839_v56 = vld [vmem:[%s4221_s30 + $0x38] sm:$0xf0] }
 0x3a0   : > { %v1656_v8 = vsel %vm1406_vm1, %v3217_v13, 0.0 }
 0x3a1   : > { %3218 = vpow2.f32 %v1654_v12 }
 0x3a3   : > { %1774 = vmatpush.bf16.msrb.mxu1 %v2978_v57 }
 0x3a7   : > { %v3219_v14 = vpop.eup %3218  ;;  %1657 = vadd.xlane.f32.xlu2 %v1656_v8  ;;  %1775 = vmatpush.bf16.msrb.mxu1 %v2977_v51 }
 0x3a8   : > { %v1659_v15 = vsel %vm1406_vm1, %v3219_v14, 0.0  ;;  %v1662_v18 = vpack.c.bf16 %v3219_v14, %v3217_v13 }
 0x3a9   : > { %1660 = vadd.xlane.f32.xlu0 %v1659_v15 }
 0x3ab   : > { %1776 = vmatpush.bf16.msrb.mxu1 %v2976_v58  ;;  %v2842_v58 = vor.u32 %v2990_v55, %v2839_v56  ;;  %v3199_v56 = vld [vmem:[%s1100_s8] ss:$0 sm:$0xff]  ;;  %s4684_s8 = scalar_lea.vmem [#allocation19], %s4190_s13 }
 0x3b4   : > { %v1664_v17 = vpop.permute.xlu1 %1663 }
 0x3b5   : > { %1676 = vmatpush.bf16.msra.mxu0 %v1664_v17 }
 0x3b8   : > { %v1424_v20 = vpop.xlane.xlu0 %1423  ;;  %2778 = vmatmul.msk.bf16.vlgmr.msra.gmra.mxu0 %vm1406_vm1, %v1662_v18 }
 0x3b9   : > { %3220 = vrcp.f32 %v1424_v20 }
 0x3bf   : > { %v3221_v23 = vpop.eup %3220 }
 0x3c0   : > { %v1446_v24 = vmul.f32 %v3221_v23, %v4335_v19 }
 0x3c2   : > { %1448 = vst.msk [vmem:[#allocation3 + $0x8] sm:$0xff] %vm1381_vm0, %v1446_v24 }
 0x3fa   : > { %v1576_v27 = vpop.xlane.xlu1 %1575 }
 0x402   : > { %v1579_v25 = vpop.xlane.xlu2 %1578 }
 0x40a   : > { %v1421_v26 = vpop.xlane.xlu2 %1420 }
 0x40b   : > { %3222 = vrcp.f32 %v1421_v26 }
 0x40c   : > { %3224 = vrcp.f32 %v1576_v27  ;;  %v1496_v34 = vpop.xlane.xlu0 %1495  ;;  %v2869_v27 = vld [vmem:[%s4221_s30 + $0x70] sm:$0xf] }
 0x411   : > { %v3223_v28 = vpop.eup %3222 }
 0x412   : > { %v1493_v29 = vpop.xlane.xlu2 %1492  ;;  %v1445_v30 = vmul.f32 %v3223_v28, %v4333_v16  ;;  %v3225_v31 = vpop.eup %3224  ;;  %v2999_v28 = vld [vmem:[%s4221_s30 + $0x74] sm:$0xf0] }
 0x413   : > { %3226 = vrcp.f32 %v1493_v29  ;;  %v2998_v29 = vld [vmem:[%s4221_s30 + $0x74] sm:$0xf] }
 0x414   : > { %v1596_v32 = vpop.f32.mrf.mxu2  ;;  %1447 = vst.msk [vmem:[#allocation3] sm:$0xff] %vm1381_vm0, %v1445_v30  ;;  %3228 = vrcp.f32 %v1496_v34  ;;  %v2870_v30 = vor.u32 %v2999_v28, %v2869_v27  ;;  %v2997_v34 = vld [vmem:[%s4221_s30 + $0x64] sm:$0xf0] }
 0x415   : > { %v1603_v33 = vmul.f32 %v3225_v31, %v1596_v32  ;;  %3230 = vrcp.f32 %v1579_v25  ;;  %v2871_v31 = vld [vmem:[%s4221_s30 + $0x78] sm:$0xf0] }
 0x416   : > { %v2874_v32 = vor.u32 %v2998_v29, %v2871_v31  ;;  %1979 = vmatpush.bf16.msrb.mxu2 %v2870_v30 }
 0x417   : > { %1607 = vrot.lane.b32.xlu0 %v1603_v33, %s3768_s22  ;;  %v1514_v19 = vpop.f32.mrf.mxu0  ;;  %v2861_v33 = vld [vmem:[%s4221_s30 + $0x60] sm:$0xf] }
 0x418   : > { %1993 = vmatpush.bf16.msra.mxu3 %v2874_v32 }
 0x419   : > { %v3227_v35 = vpop.eup %3226 }
 0x41a   : > { %v1521_v36 = vmul.f32 %v3227_v35, %v1514_v19  ;;  %v3229_v37 = vpop.eup %3228  ;;  %v1658_v42 = vpop.xlane.xlu2 %1657  ;;  %v2996_v19 = vld [vmem:[%s4221_s30 + $0x64] sm:$0xf]  ;;  %v2862_v35 = vor.u32 %v2997_v34, %v2861_v33  ;;  %v3007_v34 = vld [vmem:[%s4682_s18 + $0x38] sm:$0xff] }
 0x41b   : > { %v3231_v40 = vpop.eup %3230  ;;  %3232 = vrcp.f32 %v1658_v42  ;;  %2145 = vmatpush.bf16.msrb.mxu0 %v3007_v34 }
 0x41c   : > { %1525 = vrot.lane.b32.xlu1 %v1521_v36, %s3770_s7  ;;  %v1598_v38 = vpop.f32.mrf.mxu2  ;;  %v1661_v43 = vpop.xlane.xlu0 %1660  ;;  %v2863_v36 = vld [vmem:[%s4221_s30 + $0x68] sm:$0xf0]  ;;  %1980 = vmatpush.bf16.msrb.mxu2 %v2862_v35 }
 0x41d   : > { %v1604_v41 = vmul.f32 %v3231_v40, %v1598_v38  ;;  %3234 = vrcp.f32 %v1661_v43  ;;  %v2853_v38 = vld [vmem:[%s4221_s30 + $0x50] sm:$0xf] }
 0x41e   : > { %3236 = vrcp.f32 %v3771_v11 }
 0x41f   : > { %v1516_v39 = vpop.f32.mrf.mxu0 }
 0x420   : > { %v1522_v16 = vmul.f32 %v3229_v37, %v1516_v39  ;;  %v2866_v37 = vor.u32 %v2996_v19, %v2863_v36  ;;  %v2995_v39 = vld [vmem:[%s4221_s30 + $0x54] sm:$0xf0]  ;;  %v3006_v36 = vld [vmem:[%s4682_s18 + $0x30] sm:$0xff] }
 0x421   : > { %v3233_v44 = vpop.eup %3232  ;;  %v2854_v40 = vor.u32 %v2995_v39, %v2853_v38  ;;  %v3015_v19 = vld [vmem:[%s4682_s18 + $0x78] sm:$0xff]  ;;  %2146 = vmatpush.bf16.msrb.mxu0 %v3006_v36 }
 0x422   : > { %1527 = vrot.lane.b32.xlu2 %v1522_v16, %s3770_s7  ;;  %v2994_v16 = vld [vmem:[%s4221_s30 + $0x54] sm:$0xf]  ;;  %1994 = vmatpush.bf16.msra.mxu3 %v2866_v37  ;;  %v3014_v37 = vld [vmem:[%s4682_s18 + $0x70] sm:$0xff] }
 0x423   : > { %v3235_v47 = vpop.eup %3234  ;;  %1981 = vmatpush.bf16.msrb.mxu2 %v2854_v40  ;;  %2159 = vmatpush.bf16.msra.mxu1 %v3015_v19  ;;  %v3005_v40 = vld [vmem:[%s4682_s18 + $0x28] sm:$0xff] }
 0x424   : > { %1609 = vrot.lane.b32.xlu1 %v1604_v41, %s3768_s22  ;;  %v3237_v12 = vpop.eup %3236  ;;  %v2855_v41 = vld [vmem:[%s4221_s30 + $0x58] sm:$0xf0] }
 0x425   : > { %v1792_v13 = vmul.f32 128.0, %v3237_v12  ;;  %vm1796_vm5 = vweird.f32 %v3237_v12  ;;  %v2858_v43 = vor.u32 %v2994_v16, %v2855_v41  ;;  %v3013_v41 = vld [vmem:[%s4682_s18 + $0x68] sm:$0xff]  ;;  %2147 = vmatpush.bf16.msrb.mxu0 %v3005_v40 }
 0x427   : > { %v1793_v8 = vsub.f32 1.0, %v1792_v13  ;;  %1995 = vmatpush.bf16.msra.mxu3 %v2858_v43  ;;  %2160 = vmatpush.bf16.msra.mxu1 %v3014_v37 }
 0x429   : > { %v1794_v14 = vmul.f32 %v3237_v12, %v1793_v8  ;;  %v2813_v8 = vld [vmem:[%s4221_s30] sm:$0xf] }
 0x42b   : > { %v1795_v15 = vadd.f32 %v3237_v12, %v1794_v14  ;;  %v2985_v14 = vld [vmem:[%s4221_s30 + $0x4] sm:$0xf0]  ;;  %2161 = vmatpush.bf16.msra.mxu1 %v3013_v41 }
 0x42d   : > { %v4388_v17 = vsel %vm1796_vm5, %v3237_v12, %v1795_v15  ;;  %v2984_v15 = vld [vmem:[%s4221_s30 + $0x4] sm:$0xf] }
 0x435   : > { %v1678_v45 = vpop.f32.mrf.mxu0 }
 0x436   : > { %v1685_v46 = vmul.f32 %v3233_v44, %v1678_v45  ;;  %v2845_v44 = vld [vmem:[%s4221_s30 + $0x40] sm:$0xf]  ;;  %v2993_v45 = vld [vmem:[%s4221_s30 + $0x44] sm:$0xf0] }
 0x437   : > { %v2846_v50 = vor.u32 %v2993_v45, %v2845_v44 }
 0x438   : > { %1689 = vrot.lane.b32.xlu0 %v1685_v46, %s3769_s25 }
 0x439   : > { %1982 = vmatpush.bf16.msrb.mxu2 %v2846_v50 }
 0x43d   : > { %v1680_v48 = vpop.f32.mrf.mxu0 }
 0x43e   : > { %v1686_v49 = vmul.f32 %v3235_v47, %v1680_v48  ;;  %v2992_v47 = vld [vmem:[%s4221_s30 + $0x44] sm:$0xf]  ;;  %v2847_v48 = vld [vmem:[%s4221_s30 + $0x48] sm:$0xf0] }
 0x43f   : > { %v2850_v52 = vor.u32 %v2992_v47, %v2847_v48  ;;  %v3004_v47 = vld [vmem:[%s4682_s18 + $0x20] sm:$0xff] }
 0x440   : > { %1691 = vrot.lane.b32.xlu2 %v1686_v49, %s3769_s25  ;;  %v3012_v48 = vld [vmem:[%s4682_s18 + $0x60] sm:$0xff]  ;;  %2148 = vmatpush.bf16.msrb.mxu0 %v3004_v47 }
 0x441   : > { %1996 = vmatpush.bf16.msra.mxu3 %v2850_v52  ;;  %2162 = vmatpush.bf16.msra.mxu1 %v3012_v48 }
 0x445   : > { %1997 = vmatpush.bf16.msra.mxu3 %v2842_v58 }
 0x47c   : > { %v1528_v54 = vpop.permute.xlu2 %1527 }
 0x47d   : > { %1533 = vst.msk [vmem:[#allocation3 + $0x8] sm:$0xff] %vm1531_vm2, %v1528_v54  ;;  %v2991_v54 = vld [vmem:[%s4221_s30 + $0x34] sm:$0xf0] }
 0x47e   : > { %v2838_v57 = vor.u32 %v2991_v54, %v2837_v53 }
 0x480   : > { %1983 = vmatpush.bf16.msrb.mxu2 %v2838_v57 }
 0x489   : > { %v1608_v60 = vpop.permute.xlu0 %1607 }
 0x48e   : > { %v1526_v59 = vpop.permute.xlu1 %1525 }
 0x48f   : > { %1532 = vst.msk [vmem:[#allocation3] sm:$0xff] %vm1531_vm2, %v1526_v59  ;;  %v2829_v59 = vld [vmem:[%s4221_s30 + $0x20] sm:$0xf] }
 0x490   : > { %1614 = vst.msk [vmem:[#allocation3] sm:$0xff] %vm1613_vm3, %v1608_v60  ;;  %v2989_v60 = vld [vmem:[%s4221_s30 + $0x24] sm:$0xf0] }
 0x496   : > { %v1610_v61 = vpop.permute.xlu1 %1609 }
 0x497   : > { %1615 = vst.msk [vmem:[#allocation3 + $0x8] sm:$0xff] %vm1613_vm3, %v1610_v61 }
 0x49a   : > { %v1692_v62 = vpop.permute.xlu2 %1691 }
 0x49b   : > { %1697 = vst.msk [vmem:[#allocation3 + $0x8] sm:$0xff] %vm1695_vm4, %v1692_v62  ;;  %v2988_v62 = vld [vmem:[%s4221_s30 + $0x24] sm:$0xf] }
 0x4a2   : > { %v1699_v1 = vld [vmem:[#allocation3 + $0x8] sm:$0xff] }
 0x4aa   : > { %v1690_v63 = vpop.permute.xlu0 %1689 }
 0x4ab   : > { %1696 = vst.msk [vmem:[#allocation3] sm:$0xff] %vm1695_vm4, %v1690_v63  ;;  %v2831_v63 = vld [vmem:[%s4221_s30 + $0x28] sm:$0xf0] }
 0x4b2   : > { %v1698_v0 = vld [vmem:[#allocation3] sm:$0xff] }
 0x4b3   : > { %v1700_v2 = vpack.c.bf16 %v1699_v1, %v1698_v0 }
 0x4b5   : > { %1777 = vmatmul.bf16.vlgmr.msrb.gmra.mxu1 %v1700_v2  ;;  %v2830_v2 = vor.u32 %v2989_v60, %v2829_v59 }
 0x4b7   : > { %1984 = vmatpush.bf16.msrb.mxu2 %v2830_v2 }
 0x532   : > { %v1778_v4 = vpop.f32.mrf.mxu1 }
 0x533   : > { %v1779_v5 = vadd.f32 %v3198_v3, %v1778_v4  ;;  %v2834_v4 = vor.u32 %v2988_v62, %v2831_v63 }
 0x535   : > { %v1783_v6 = vadd.f32 %v1779_v5, %v4290_v21  ;;  %v2821_v5 = vld [vmem:[%s4221_s30 + $0x10] sm:$0xf]  ;;  %1998 = vmatpush.bf16.msra.mxu3 %v2834_v4 }
 0x537   : > { %1787 = vadd.xlane.f32.xlu1 %v1783_v6 }
 0x53a   : > { %v1780_v7 = vpop.f32.mrf.mxu1 }
 0x53b   : > { %v1781_v9 = vadd.f32 %v3198_v3, %v1780_v7  ;;  %v2986_v7 = vld [vmem:[%s4221_s30 + $0x14] sm:$0xf] }
 0x53d   : > { %v1784_v10 = vadd.f32 %v1781_v9, %v4292_v22  ;;  %v2823_v9 = vld [vmem:[%s4221_s30 + $0x18] sm:$0xf0] }
 0x53e   : > { %v2826_v13 = vor.u32 %v2986_v7, %v2823_v9 }
 0x53f   : > { %1789 = vadd.xlane.f32.xlu0 %v1784_v10 }
 0x540   : > { %1999 = vmatpush.bf16.msra.mxu3 %v2826_v13  ;;  %v3010_v13 = vld [vmem:[%s4682_s18 + $0x50] sm:$0xff] }
 0x5aa   : > { %v1788_v21 = vpop.xlane.xlu1 %1787 }
 0x5ab   : > { %v1798_v18 = vmul.f32 %v4388_v17, %v1788_v21  ;;  %v2815_v21 = vld [vmem:[%s4221_s30 + $0x8] sm:$0xf0] }
 0x5ac   : > { %v2818_v27 = vor.u32 %v2984_v15, %v2815_v21  ;;  %v3000_v15 = vld [vmem:[%s4682_s18] sm:$0xff] }
 0x5ad   : > { %v4391_v20 = vsub.f32 %v1783_v6, %v1798_v18  ;;  %v2987_v6 = vld [vmem:[%s4221_s30 + $0x14] sm:$0xf0] }
 0x5ae   : > { %v2822_v11 = vor.u32 %v2987_v6, %v2821_v5  ;;  %2000 = vmatpush.bf16.msra.mxu3 %v2818_v27  ;;  %v3200_v5 = vld [vmem:[%s4684_s8] ss:$0 sm:$0xff] }
 0x5af   : > { %v1802_v22 = vmul.f32 %v4391_v20, %v4391_v20  ;;  %v1813_v63 = vmul.f32 %v3199_v56, %v4391_v20  ;;  %v3008_v21 = vld [vmem:[%s4682_s18 + $0x40] sm:$0xff] }
 0x5b0   : > { %1985 = vmatpush.bf16.msrb.mxu2 %v2822_v11  ;;  %v3003_v11 = vld [vmem:[%s4682_s18 + $0x18] sm:$0xff] }
 0x5b1   : > { %1804 = vadd.xlane.f32.xlu2 %v1802_v22  ;;  %2149 = vmatpush.bf16.msrb.mxu0 %v3003_v11 }
 0x5b2   : > { %v1790_v23 = vpop.xlane.xlu0 %1789 }
 0x5b3   : > { %v1799_v24 = vmul.f32 %v4388_v17, %v1790_v23  ;;  %v2814_v23 = vor.u32 %v2985_v14, %v2813_v8  ;;  %v3001_v8 = vld [vmem:[%s4682_s18 + $0x8] sm:$0xff] }
 0x5b4   : > { %v3009_v14 = vld [vmem:[%s4682_s18 + $0x48] sm:$0xff] }
 0x5b5   : > { %v4396_v25 = vsub.f32 %v1784_v10, %v1799_v24  ;;  %1986 = vmatpush.bf16.msrb.mxu2 %v2814_v23 }
 0x5b7   : > { %v1803_v26 = vmul.f32 %v4396_v25, %v4396_v25  ;;  %v1814_v2 = vmul.f32 %v3199_v56, %v4396_v25  ;;  %v3011_v25 = vld [vmem:[%s4682_s18 + $0x58] sm:$0xff] }
 0x5b8   : > { %2163 = vmatpush.bf16.msra.mxu1 %v3011_v25 }
 0x5b9   : > { %1806 = vadd.xlane.f32.xlu1 %v1803_v26 }
 0x5bc   : > { %2164 = vmatpush.bf16.msra.mxu1 %v3010_v13 }
 0x5c0   : > { %2165 = vmatpush.bf16.msra.mxu1 %v3009_v14 }
 0x5c4   : > { %2166 = vmatpush.bf16.msra.mxu1 %v3008_v21 }
 0x624   : > { %v1805_v42 = vpop.xlane.xlu2 %1804 }
 0x625   : > { %v1808_v46 = vmul.f32 %v1805_v42, %v4388_v17 }
 0x627   : > { %v1815_v49 = vadd.f32 1e-05, %v1808_v46 }
 0x629   : > { %3238 = vrsqrt.f32 %v1815_v49  ;;  %vm1824_vm6 = vcmp.eq.f32.partialorder %v1815_v49, inf  ;;  %v1827_v30 = vand.u32 2147483648, %v1815_v49  ;;  %vm1826_vm7 = vcmp.eq.f32.partialorder %v1815_v49, 0.0 }
 0x62c   : > { %v1807_v51 = vpop.xlane.xlu1 %1806 }
 0x62d   : > { %v1809_v61 = vmul.f32 %v1807_v51, %v4388_v17 }
 0x62f   : > { %v3239_v0 = vpop.eup %3238  ;;  %v1816_v1 = vadd.f32 1e-05, %v1809_v61 }
 0x630   : > { %v1818_v3 = vmul.f32 %v3239_v0, %v1815_v49 }
 0x631   : > { %3240 = vrsqrt.f32 %v1816_v1  ;;  %vm1836_vm8 = vcmp.eq.f32.partialorder %v1816_v1, inf  ;;  %v1839_v16 = vand.u32 2147483648, %v1816_v1  ;;  %vm1838_vm9 = vcmp.eq.f32.partialorder %v1816_v1, 0.0 }
 0x632   : > { %v1819_v10 = vmul.f32 %v3239_v0, %v1818_v3 }
 0x634   : > { %v1820_v12 = vmul.f32 0.5, %v1819_v10 }
 0x636   : > { %v1821_v18 = vsub.f32 1.5, %v1820_v12  ;;  %v3002_v12 = vld [vmem:[%s4682_s18 + $0x10] sm:$0xff] }
 0x637   : > { %v3241_v22 = vpop.eup %3240  ;;  %2150 = vmatpush.bf16.msrb.mxu0 %v3002_v12 }
 0x638   : > { %v1822_v24 = vmul.f32 %v3239_v0, %v1821_v18  ;;  %v1830_v26 = vmul.f32 %v3241_v22, %v1816_v1  ;;  %v1893_v18 = vld [vmem:[%s4250_s2] sm:$0x3] }
 0x63a   : > { %v1823_v28 = vmul.f32 %v1822_v24, %v1815_v49  ;;  %v1831_v29 = vmul.f32 %v3241_v22, %v1830_v26  ;;  %v1895_v24 = vperm.slane %v1893_v18, 0  ;;  %v1896_v26 = vperm.slane %v1893_v18, 1 }
 0x63b   : > { %2151 = vmatpush.bf16.msrb.mxu0 %v3001_v8 }
 0x63c   : > { %v1832_v31 = vmul.f32 0.5, %v1831_v29  ;;  %v1825_v32 = vsel %vm1824_vm6, %v1815_v49, %v1823_v28 }
 0x63d   : > { %v1828_v33 = vsel %vm1826_vm7, %v1827_v30, %v1825_v32 }
 0x63e   : > { %v1833_v35 = vsub.f32 1.5, %v1832_v31  ;;  %3242 = vrcp.f32 %v1828_v33  ;;  %v1852_v53 = vand.u32 2147483648, %v1828_v33  ;;  %vm1846_vm11 = vweird.f32 %v1828_v33 }
 0x63f   : > { %v1850_v54 = vand.u32 2147483647, %v1828_v33  ;;  %2152 = vmatpush.bf16.msrb.mxu0 %v3000_v15 }
 0x640   : > { %v1834_v38 = vmul.f32 %v3241_v22, %v1833_v35  ;;  %v1853_v58 = vor.u32 1.1754944e-38, %v1852_v53 }
 0x641   : > { %vm1851_vm13 = vcmp.eq.f32.partialorder %v1850_v54, 8.507059e+37 }
 0x642   : > { %v1835_v39 = vmul.f32 %v1834_v38, %v1816_v1  ;;  %v3201_v38 = vld [vmem:[%s1107_s3] ss:$0 sm:$0xff] }
 0x644   : > { %v3243_v42 = vpop.eup %3242  ;;  %v1837_v43 = vsel %vm1836_vm8, %v1816_v1, %v1835_v39 }
 0x645   : > { %v1840_v44 = vsel %vm1838_vm9, %v1839_v16, %v1837_v43  ;;  %v1842_v45 = vmul.f32 %v3243_v42, %v1828_v33  ;;  %vm1847_vm10 = vweird.f32 %v3243_v42 }
 0x646   : > { %3244 = vrcp.f32 %v1840_v44  ;;  %vm1848_vm12 = vmor %vm1846_vm11, %vm1847_vm10  ;;  %v1867_v59 = vand.u32 2147483648, %v1840_v44  ;;  %v1865_v61 = vand.u32 2147483647, %v1840_v44  ;;  %vm1861_vm15 = vweird.f32 %v1840_v44 }
 0x647   : > { %v1843_v46 = vsub.f32 1.0, %v1842_v45 }
 0x648   : > { %v1868_v1 = vor.u32 1.1754944e-38, %v1867_v59  ;;  %vm1866_vm1 = vcmp.eq.f32.partialorder %v1865_v61, 8.507059e+37 }
 0x649   : > { %v1844_v49 = vmul.f32 %v3243_v42, %v1843_v46 }
 0x64b   : > { %v1845_v50 = vadd.f32 %v3243_v42, %v1844_v49 }
 0x64c   : > { %v3245_v52 = vpop.eup %3244 }
 0x64d   : > { %v1857_v55 = vmul.f32 %v3245_v52, %v1840_v44  ;;  %v1849_v57 = vsel %vm1848_vm12, %v3243_v42, %v1845_v50  ;;  %vm1862_vm14 = vweird.f32 %v3245_v52 }
 0x64e   : > { %v1854_v62 = vsel %vm1851_vm13, %v1853_v58, %v1849_v57  ;;  %vm1863_vm0 = vmor %vm1861_vm15, %vm1862_vm14 }
 0x64f   : > { %v1858_v51 = vsub.f32 1.0, %v1857_v55  ;;  %v1855_v3 = vmul.f32 %v1854_v62, %v1813_v63 }
 0x651   : > { %v1859_v60 = vmul.f32 %v3245_v52, %v1858_v51  ;;  %v1874_v20 = vadd.f32 %v3200_v5, %v1855_v3 }
 0x653   : > { %v1860_v0 = vadd.f32 %v3245_v52, %v1859_v60 }
 0x655   : > { %v1864_v4 = vsel %vm1863_vm0, %v3245_v52, %v1860_v0 }
 0x656   : > { %v1869_v6 = vsel %vm1866_vm1, %v1868_v1, %v1864_v4 }
 0x657   : > { %v1870_v7 = vmul.f32 %v1869_v6, %v1814_v2 }
 0x659   : > { %v1875_v9 = vadd.f32 %v3200_v5, %v1870_v7 }
 0x65b   : > { %v1876_v10 = vpack.c.bf16 %v1875_v9, %v1874_v20 }
 0x65d   : > { %1987 = vmatmul.bf16.vlgmr.msrb.gmra.mxu2 %v1876_v10  ;;  %2001 = vmatmul.bf16.vlgmr.msra.gmra.mxu3 %v1876_v10 }
 0x6e0   : > { %v1988_v22 = vpop.f32.mrf.mxu2  ;;  %v2002_v23 = vpop.f32.mrf.mxu3 }
 0x6e1   : > { %v1989_v27 = vadd.f32 %v1988_v22, %v1895_v24  ;;  %v2003_v28 = vadd.f32 %v2002_v23, %v1896_v26  ;;  %v3202_v23 = vld [vmem:[%s1110_s23] ss:$0 sm:$0xff]  ;;  %s4688_s23 = sld [smem:[#allocation38_spill]] }
 0x6e3   : > { %v2007_v33 = vmax.f32 %v1989_v27, 0.0  ;;  %v2008_v34 = vmax.f32 %v2003_v28, 0.0 }
 0x6e7   : > { %p2939_p13 = scmp.ne.s32.totalorder %s4688_s23, 1 }
 0x6e8   : > { %v1990_v29 = vpop.f32.mrf.mxu2  ;;  %v2004_v30 = vpop.f32.mrf.mxu3 }
 0x6e9   : > { %v1991_v31 = vadd.f32 %v1990_v29, %v1895_v24  ;;  %v2005_v32 = vadd.f32 %v2004_v30, %v1896_v26 }
 0x6eb   : > { %v2009_v19 = vmax.f32 %v1991_v31, 0.0  ;;  %v2010_v35 = vmax.f32 %v2005_v32, 0.0  ;;  %v3203_v31 = vld [vmem:[%s1113_s20] ss:$0 sm:$0xff] }
 0x6ed   : > { %v2011_v36 = vpack.c.bf16 %v2009_v19, %v2007_v33  ;;  %v2012_v37 = vpack.c.bf16 %v2010_v35, %v2008_v34 }
 0x6ef   : > { %2153 = vmatmul.bf16.vlgmr.msrb.gmra.mxu0 %v2011_v36  ;;  %2167 = vmatmul.bf16.vlgmr.msra.gmra.mxu1 %v2012_v37 }
 0x76c   : > { %v2154_v39 = vpop.f32.mrf.mxu0  ;;  %v2168_v16 = vpop.f32.mrf.mxu1 }
 0x76d   : > { %v2155_v40 = vadd.f32 %v3201_v38, %v2154_v39 }
 0x76f   : > { %v2169_v41 = vadd.f32 %v2168_v16, %v2155_v40 }
 0x771   : > { %v2173_v42 = vadd.f32 %v2169_v41, %v1874_v20 }
 0x773   : > { %2177 = vadd.xlane.f32.xlu0 %v2173_v42 }
 0x774   : > { %v2156_v43 = vpop.f32.mrf.mxu0  ;;  %v2170_v45 = vpop.f32.mrf.mxu1 }
 0x775   : > { %v2157_v44 = vadd.f32 %v3201_v38, %v2156_v43 }
 0x777   : > { %v2171_v46 = vadd.f32 %v2170_v45, %v2157_v44 }
 0x779   : > { %v2174_v47 = vadd.f32 %v2171_v46, %v1875_v9 }
 0x77b   : > { %2179 = vadd.xlane.f32.xlu2 %v2174_v47 }
 0x7e6   : > { %v2178_v48 = vpop.xlane.xlu0 %2177 }
 0x7e7   : > { %v2181_v49 = vmul.f32 %v2178_v48, %v4388_v17 }
 0x7e9   : > { %v2183_v50 = vsub.f32 %v2173_v42, %v2181_v49 }
 0x7eb   : > { %v2185_v52 = vmul.f32 %v2183_v50, %v2183_v50  ;;  %v2196_v30 = vmul.f32 %v3202_v23, %v2183_v50 }
 0x7ed   : > { %2187 = vadd.xlane.f32.xlu1 %v2185_v52 }
 0x7ee   : > { %v2180_v53 = vpop.xlane.xlu2 %2179 }
 0x7ef   : > { %v2182_v54 = vmul.f32 %v2180_v53, %v4388_v17 }
 0x7f1   : > { %v4467_v55 = vsub.f32 %v2174_v47, %v2182_v54 }
 0x7f3   : > { %v2186_v56 = vmul.f32 %v4467_v55, %v4467_v55  ;;  %v2197_v41 = vmul.f32 %v3202_v23, %v4467_v55 }
 0x7f5   : > { %2189 = vadd.xlane.f32.xlu0 %v2186_v56 }
 0x860   : > { %v2188_v57 = vpop.xlane.xlu1 %2187 }
 0x861   : > { %v2191_v51 = vmul.f32 %v2188_v57, %v4388_v17 }
 0x863   : > { %v2198_v58 = vadd.f32 1e-05, %v2191_v51 }
 0x865   : > { %3246 = vrsqrt.f32 %v2198_v58  ;;  %vm2207_vm2 = vcmp.eq.f32.partialorder %v2198_v58, inf  ;;  %v2210_v20 = vand.u32 2147483648, %v2198_v58  ;;  %vm2209_vm3 = vcmp.eq.f32.partialorder %v2198_v58, 0.0 }
 0x868   : > { %v2190_v59 = vpop.xlane.xlu0 %2189 }
 0x869   : > { %v2192_v60 = vmul.f32 %v2190_v59, %v4388_v17 }
 0x86b   : > { %v3247_v61 = vpop.eup %3246  ;;  %v2199_v62 = vadd.f32 1e-05, %v2192_v60 }
 0x86c   : > { %v2201_v63 = vmul.f32 %v3247_v61, %v2198_v58 }
 0x86d   : > { %3248 = vrsqrt.f32 %v2199_v62  ;;  %vm2219_vm4 = vcmp.eq.f32.partialorder %v2199_v62, inf  ;;  %v2222_v8 = vand.u32 2147483648, %v2199_v62  ;;  %vm2221_vm5 = vcmp.eq.f32.partialorder %v2199_v62, 0.0 }
 0x86e   : > { %v2202_v0 = vmul.f32 %v3247_v61, %v2201_v63 }
 0x870   : > { %v2203_v1 = vmul.f32 0.5, %v2202_v0 }
 0x872   : > { %v2204_v2 = vsub.f32 1.5, %v2203_v1 }
 0x873   : > { %v3249_v3 = vpop.eup %3248 }
 0x874   : > { %v2205_v4 = vmul.f32 %v3247_v61, %v2204_v2  ;;  %v2213_v5 = vmul.f32 %v3249_v3, %v2199_v62 }
 0x876   : > { %v2206_v6 = vmul.f32 %v2205_v4, %v2198_v58  ;;  %v2214_v7 = vmul.f32 %v3249_v3, %v2213_v5 }
 0x878   : > { %v2208_v9 = vsel %vm2207_vm2, %v2198_v58, %v2206_v6  ;;  %v2215_v10 = vmul.f32 0.5, %v2214_v7 }
 0x879   : > { %v2211_v11 = vsel %vm2209_vm3, %v2210_v20, %v2208_v9 }
 0x87a   : > { %3250 = vrcp.f32 %v2211_v11  ;;  %v2216_v17 = vsub.f32 1.5, %v2215_v10  ;;  %v2235_v22 = vand.u32 2147483648, %v2211_v11  ;;  %v2233_v26 = vand.u32 2147483647, %v2211_v11 }
 0x87b   : > { %vm2229_vm7 = vweird.f32 %v2211_v11 }
 0x87c   : > { %v2217_v25 = vmul.f32 %v3249_v3, %v2216_v17  ;;  %v2236_v28 = vor.u32 1.1754944e-38, %v2235_v22  ;;  %vm2234_vm9 = vcmp.eq.f32.partialorder %v2233_v26, 8.507059e+37 }
 0x87e   : > { %v2218_v12 = vmul.f32 %v2217_v25, %v2199_v62 }
 0x880   : > { %v3251_v13 = vpop.eup %3250  ;;  %v2220_v15 = vsel %vm2219_vm4, %v2199_v62, %v2218_v12 }
 0x881   : > { %v2225_v14 = vmul.f32 %v3251_v13, %v2211_v11  ;;  %v2223_v21 = vsel %vm2221_vm5, %v2222_v8, %v2220_v15  ;;  %vm2230_vm6 = vweird.f32 %v3251_v13 }
 0x882   : > { %3252 = vrcp.f32 %v2223_v21  ;;  %vm2231_vm8 = vmor %vm2229_vm7, %vm2230_vm6  ;;  %v2250_v37 = vand.u32 2147483648, %v2223_v21  ;;  %v2248_v39 = vand.u32 2147483647, %v2223_v21  ;;  %vm2244_vm11 = vweird.f32 %v2223_v21 }
 0x883   : > { %v2226_v18 = vsub.f32 1.0, %v2225_v14 }
 0x884   : > { %v2251_v40 = vor.u32 1.1754944e-38, %v2250_v37  ;;  %vm2249_vm13 = vcmp.eq.f32.partialorder %v2248_v39, 8.507059e+37 }
 0x885   : > { %v2227_v24 = vmul.f32 %v3251_v13, %v2226_v18 }
 0x887   : > { %v2228_v27 = vadd.f32 %v3251_v13, %v2227_v24 }
 0x888   : > { %v3253_v29 = vpop.eup %3252 }
 0x889   : > { %v2232_v32 = vsel %vm2231_vm8, %v3251_v13, %v2228_v27  ;;  %v2240_v34 = vmul.f32 %v3253_v29, %v2223_v21  ;;  %vm2245_vm10 = vweird.f32 %v3253_v29 }
 0x88a   : > { %v2237_v33 = vsel %vm2234_vm9, %v2236_v28, %v2232_v32  ;;  %vm2246_vm12 = vmor %vm2244_vm11, %vm2245_vm10 }
 0x88b   : > { %v2238_v19 = vmul.f32 %v2237_v33, %v2196_v30  ;;  %v2241_v35 = vsub.f32 1.0, %v2240_v34 }
 0x88d   : > { %v2257_v36 = vadd.f32 %v3203_v31, %v2238_v19  ;;  %v2242_v38 = vmul.f32 %v3253_v29, %v2241_v35 }
 0x88f   : > { %2259 = vst [vmem:[#allocation2] sm:$0xff] %v2257_v36  ;;  %v2243_v16 = vadd.f32 %v3253_v29, %v2242_v38 }
 0x891   : > { %v2247_v42 = vsel %vm2246_vm12, %v3253_v29, %v2243_v16 }
 0x892   : > { %v2252_v43 = vsel %vm2249_vm13, %v2251_v40, %v2247_v42 }
 0x893   : > { %v2253_v44 = vmul.f32 %v2252_v43, %v2197_v41  ;;  %2264 = sbr.rel (%p2939_p13) target bundleno = 2202 (0x89a), region = 152 }
 0x895   : > { %v2258_v45 = vadd.f32 %v3203_v31, %v2253_v44 }
 0x897   : > { %2260 = vst [vmem:[#allocation2 + $0x8] sm:$0xff] %v2258_v45 }
 0x898   : > { %2265 = vst [vmem:[%s4266_s12] sm:$0xff] %v2257_v36 }
 0x899   : > { %2266 = vst [vmem:[%s4266_s12 + $0x8] sm:$0xff] %v2258_v45 }
 0x89a PF: > { %s4689_s4 = sld [smem:[#allocation39_spill]]  ;;  %s2280_s25 = sshll.u32 %s4266_s12, 4  ;;  %s2281_s25 = int_to_ptr.vmem [resolvable:$true] %s2280_s25 }
 0x89b   : > { %s4691_s27 = sld [smem:[#allocation71_spill]]  ;;  %s2268_s10 = scalar_lea.sflag [#allocation6], %s4172_s17 }
 0x8a0   : > { %s3016_s21 = sshll.u32 %s4689_s4, 4 }
 0x8a1   : > { %s2279_s22 = scalar_lea.hbm %s4691_s27, %s3016_s21  ;;  %s3634_s18 = scalar_lea.hbm %s4691_s27, 32 }
 0x8a2   : > { %s2282_s7 = sshll.u32 %s2279_s22, 4  ;;  %s2283_s7 = int_to_ptr.hbm [resolvable:$true] %s2282_s7 }
 0x8a3   : > { %s3628_s26 = sshra.s32 %s2283_s7, 4  ;;  %s3629_s26 = int_to_ptr.hbm [resolvable:$true] %s3628_s26 }
 0x8a4   : > { %s3630_s29 = scalar_lea.hbm %s3629_s26, 16  ;;  %p3635_p8 = scmp.lt.s32.totalorder %s3629_s26, %s4691_s27 }
 0x8a5   : > { %p3631_p3 = scmp.ne.s32.totalorder %s3629_s26, %s3630_s29  ;;  %p3636_p11 = scmp.lt.s32.totalorder %s3634_s18, %s3630_s29 }
 0x8a7   : > { %p3632_p5 = pnand %p3631_p3, %p4089_p0  ;;  %p3637_p2 = por %p3636_p11, %p3635_p8 }
 0x8a9   : > { %p3633_p6 = pneg %p3632_p5 }
 0x8ab   : > { %p3638_p1 = pnand %p3637_p2, %p3633_p6 }
 0x8ad   : > { %3641 = shalt.err (!%p3638_p1)
}
 0x8ae   : > { %s3772_s17 = smov 128   ;;  %s3773_s12 = smov 8  }
 0x8af   : > { %3045 = dma.vmem_to_hbm [thread:$0]  (%p4089_p0), %s2281_s25, 256, %s2283_s7, %s2268_s10, %s3772_s17, %s3772_s17, %s3773_s12  }
 0x8b0 PF: > { %s4692_s11 = sld [smem:[#allocation42_spill]] }
 0x8b1   : > { %s4693_s8 = sld [smem:[#allocation35_spill]] }
 0x8b6   : > { %p3094_p4 = scmp.ge.s32.totalorder %s4692_s11, 2 }
 0x8b7   : > { %s2297_s2 = sand.u32 1, %s4693_s8  }
 0x8b8   : > { %p3086_p9 = pnand %p3094_p4, %p4101_p10  ;;  %s2298_s14 = scalar_lea.sflag [#allocation6], %s2297_s2 }
 0x8ba   : > { %p3087_p12 = pneg %p3086_p9 }
 0x8bc   : > { %3715 = dma.done.wait (%p3087_p12), %s2298_s14, 256  }
 0x8bd   : > { %3717 = vsyncadd (%p3087_p12), %s2298_s14, 4294967040  ;;  %s51_s3 = sadd.s32 1, %s4692_s11   ;;  %s4695_s0 = sld [smem:[#allocation33_spill]] }
 0x8be   : > { %p48_p7 = scmp.ge.s32.totalorder %s51_s3, 6   ;;  %s4696_s30 = sld [smem:[#allocation34_spill]] }
 0x8bf   : > { %s4697_s20 = sld [smem:[#allocation47_spill]] }
 0x8c0   : > { %s4698_s21 = sld [smem:[#allocation36_spill]] }
 0x8c1   : > { %s4699_s1 = sld [smem:[#allocation37_spill]] }
 0x8c2   : > { %s4700_s22 = sld [smem:[#allocation49_spill]]  ;;  %50 = sbr.rel (!%p48_p7) target bundleno = 41 (0x29), region = 287 }
 0x8c3   : > { %s4701_s2 = sld [smem:[#allocation40_spill]] }
 0x8c4   : > { %s4702_s23 = sld [smem:[#allocation41_spill]] }
 0x8c5   : > { %s4703_s24 = sld [smem:[#allocation45_spill]] }
 0x8c6   : > { %s4704_s25 = sld [smem:[#allocation46_spill]] }
 0x8c7   :  { %2304 = vsyncpa [#allocation5], 1 }
 0x8c8   :  { %2306 = vsyncpa [#allocation5 + $0x1], 1 }
 0x8c9   :  { %2307 = vsyncpa [#allocation8], 1 }
 0x8ca   :  { %2308 = vsyncpa [#allocation11], 1 }
 0x8cb   :  { %2310 = vsyncpa [#allocation11 + $0x1], 1 }
 0x8cc   :  { %2311 = vsyncpa [#allocation14], 1 }
 0x8cd   :  { %2313 = vsyncpa [#allocation14 + $0x1], 1 }
 0x8ce   :  { %2314 = vsyncpa [#allocation17], 1 }
 0x8cf   :  { %2316 = vsyncpa [#allocation17 + $0x1], 1 }
 0x8d0   :  { %2317 = vsyncpa [#allocation20], 1 }
 0x8d1   :  { %2319 = vsyncpa [#allocation20 + $0x1], 1 }
 0x8d2   :  { %2320 = vsyncpa [#allocation23], 1 }
 0x8d3   :  { %2322 = vsyncpa [#allocation23 + $0x1], 1 }
 0x8d4   :  { %2323 = vsyncpa [#allocation6], 1 }
 0x8d5   :  { %2325 = vsyncpa [#allocation6 + $0x1], 1 }

</bundles_post_ra>
